<compile_context>
chip_gen: v6e
topology: v6e:2x2x1
jax: 0.10.0
libtpu: 0.0.40
codegen_flags: <defaults>
</compile_context>

<pallas_src>
import jax
import jax.numpy as jnp
from jax.experimental import pallas as pl
from jax.experimental.pallas import tpu as pltpu

H1, H2 = 400, 300      # logical hidden sizes (match the torch module)
LANE = 128
SUBLANE = 8


def _round_up(x, m):
    return ((x + m - 1) // m) * m


def _pad_to(a, shape):
    return jnp.pad(a, [(0, t - s) for s, t in zip(a.shape, shape)])


def actor_kernel(obs_ref, w1_ref, b1_ref, w2_ref, b2_ref, w3_ref, b3_ref, out_ref):
    """One batch tile of tanh(relu(relu(x W1 + b1) W2 + b2) W3 + b3).

    Transposed layout: features on sublanes, batch on the 128-lane axis, so the
    tiny act_dim never sits on the lane axis and all stores are lane-dense.
    bf16 MXU matmuls with f32 accumulation; bias/ReLU/tanh in f32.
    """
    x = obs_ref[...]                                               # (d0, tb) bf16
    h1 = jnp.dot(w1_ref[...], x, preferred_element_type=jnp.float32)
    h1 = jnp.maximum(h1 + b1_ref[...], 0.0)                        # (d1, tb) f32
    h2 = jnp.dot(w2_ref[...], h1.astype(jnp.bfloat16),
                 preferred_element_type=jnp.float32)
    h2 = jnp.maximum(h2 + b2_ref[...], 0.0)                        # (d2, tb) f32
    h3 = jnp.dot(w3_ref[...], h2.astype(jnp.bfloat16),
                 preferred_element_type=jnp.float32)
    out_ref[...] = jnp.tanh(h3 + b3_ref[...]).astype(out_ref.dtype)  # (d3, tb)


def prepare_params(w1, b1, w2, b2, w3, b3):
    """One-time transpose + sublane-pad + bf16 cast of the Linear parameters.

    Call once at parameter creation / update; reuse the result for every
    forward call (this hoists all weight pad/cast HBM traffic out of the
    per-call path).  Inputs are in (in_features, out_features) layout.
    """
    obs_dim, h1 = w1.shape
    h2 = w2.shape[1]
    act_dim = w3.shape[1]
    d0 = _round_up(obs_dim, SUBLANE)   # 16  -> 16
    d1 = _round_up(h1, SUBLANE)        # 400 -> 400
    d2 = _round_up(h2, SUBLANE)        # 300 -> 304
    d3 = _round_up(act_dim, SUBLANE)   # 4   -> 8
    w1_t = _pad_to(jnp.asarray(w1).T, (d1, d0)).astype(jnp.bfloat16)
    w2_t = _pad_to(jnp.asarray(w2).T, (d2, d1)).astype(jnp.bfloat16)
    w3_t = _pad_to(jnp.asarray(w3).T, (d3, d2)).astype(jnp.bfloat16)
    b1_t = _pad_to(jnp.asarray(b1).reshape(-1, 1), (d1, 1)).astype(jnp.float32)
    b2_t = _pad_to(jnp.asarray(b2).reshape(-1, 1), (d2, 1)).astype(jnp.float32)
    b3_t = _pad_to(jnp.asarray(b3).reshape(-1, 1), (d3, 1)).astype(jnp.float32)
    return (w1_t, b1_t, w2_t, b2_t, w3_t, b3_t)


def actor_forward(obs, params, act_dim, *, batch_tile=1024):
    """tanh(relu(relu(obs @ W1 + b1) @ W2 + b2) @ W3 + b3), f32, shape (batch, act_dim).

    `params` must come from prepare_params()."""
    w1_t, b1_t, w2_t, b2_t, w3_t, b3_t = params
    batch, obs_dim = obs.shape
    d1, d0 = w1_t.shape
    d2, _d1 = w2_t.shape
    d3, _d2 = w3_t.shape
    assert _d1 == d1 and _d2 == d2 and obs_dim <= d0 and act_dim <= d3

    # Batch lives on the 128-lane axis.  One grid step for tiny batches; >=2
    # steps once there is enough work so the "parallel" axis can shard across
    # both TensorCores on v7x; tiles capped at batch_tile (v6e sweet spot).
    bp = _round_up(batch, LANE)
    if bp <= 2 * LANE:
        tb = bp
    else:
        tb = min(batch_tile, _round_up((bp + 1) // 2, LANE))
    bp = _round_up(bp, tb)
    grid = (bp // tb,)

    # Per-call work touches only the small activation tensor (cast/transpose/pad).
    obs_t = _pad_to(obs.astype(jnp.bfloat16).T, (d0, bp))

    def resident(shape):
        # Constant index_map -> block stays VMEM-resident across grid steps
        # (no re-DMA).  Total resident params ~260 KiB bf16: VMEM is a non-issue.
        return pl.BlockSpec(shape, lambda i: (0, 0))

    flops = 2 * bp * (d0 * d1 + d1 * d2 + d2 * d3)
    bytes_accessed = (
        obs_t.size * 2
        + (w1_t.size + w2_t.size + w3_t.size) * 2
        + (b1_t.size + b2_t.size + b3_t.size) * 4
        + d3 * bp * 4)

    out_t = pl.pallas_call(
        actor_kernel,
        out_shape=jax.ShapeDtypeStruct((d3, bp), jnp.float32),
        grid=grid,
        in_specs=[
            pl.BlockSpec((d0, tb), lambda i: (0, i)),   # obs tile, batch on lanes
            resident((d1, d0)), resident((d1, 1)),      # layer 1 params
            resident((d2, d1)), resident((d2, 1)),      # layer 2 params
            resident((d3, d2)), resident((d3, 1)),      # layer 3 params
        ],
        out_specs=pl.BlockSpec((d3, tb), lambda i: (0, i)),
        compiler_params=pltpu.CompilerParams(
            dimension_semantics=("parallel",),
            vmem_limit_bytes=32 * 1024 * 1024),
        cost_estimate=pl.CostEstimate(
            flops=flops,
            transcendentals=d3 * bp,
            bytes_accessed=bytes_accessed),
    )(obs_t, w1_t, b1_t, w2_t, b2_t, w3_t, b3_t)

    # Tiny (act_dim x batch) slab; slice + transpose back to (batch, act_dim).
    return out_t[:act_dim, :batch].T


def init_params(key, obs_dim, act_dim, h1=H1, h2=H2):
    """Deterministic synthetic parameters ((in, out) layout, f32)."""
    ks = jax.random.split(key, 6)
    scale = 0.05
    w1 = scale * jax.random.normal(ks[0], (obs_dim, h1), jnp.float32)
    b1 = scale * jax.random.normal(ks[1], (1, h1), jnp.float32)
    w2 = scale * jax.random.normal(ks[2], (h1, h2), jnp.float32)
    b2 = scale * jax.random.normal(ks[3], (1, h2), jnp.float32)
    w3 = scale * jax.random.normal(ks[4], (h2, act_dim), jnp.float32)
    b3 = scale * jax.random.normal(ks[5], (1, act_dim), jnp.float32)
    return w1, b1, w2, b2, w3, b3


def reference_forward(obs, w1, b1, w2, b2, w3, b3):
    h1 = jnp.maximum(obs @ w1 + b1, 0.0)
    h2 = jnp.maximum(h1 @ w2 + b2, 0.0)
    return jnp.tanh(h2 @ w3 + b3)


if __name__ == "__main__":
    key = jax.random.PRNGKey(0)
    k_obs, k_par = jax.random.split(key)

    batch, obs_dim, act_dim = 8, 16, 4
    obs = jax.random.normal(k_obs, (batch, obs_dim), jnp.float32)
    raw = init_params(k_par, obs_dim, act_dim)

    # Hoisted, one-time param preparation (transpose + pad-to-8 + bf16 cast).
    params = prepare_params(*raw)

    out = actor_forward(obs, params, act_dim)
    out = jax.block_until_ready(out)
    assert out.shape == (batch, act_dim)

    # f32 reference (bf16 weight storage introduces ~1e-3-level deviation).
    ref_f32 = reference_forward(obs, *raw)
    assert jnp.allclose(out, ref_f32, atol=1e-2, rtol=1e-2), "mismatch vs. f32 reference"

    # bf16-weight reference: validates the kernel math tightly.
    raw_bf16 = tuple(p.astype(jnp.bfloat16).astype(jnp.float32) for p in raw)
    obs_bf16 = obs.astype(jnp.bfloat16).astype(jnp.float32)
    ref_bf16 = reference_forward(obs_bf16, *raw_bf16)
    assert jnp.allclose(out, ref_bf16, atol=2e-3, rtol=2e-3), "mismatch vs. bf16 reference"

    print("KERNEL_OK")
</pallas_src>

<mosaic_0001>
module attributes {stable_mosaic.version = 11 : i64} {
  func.func @actor_kernel(%arg0: i32, %arg1: memref<16x128xbf16, #tpu.memory_space<vmem>>, %arg2: memref<400x16xbf16, #tpu.memory_space<vmem>>, %arg3: memref<400x1xf32, #tpu.memory_space<vmem>>, %arg4: memref<304x400xbf16, #tpu.memory_space<vmem>>, %arg5: memref<304x1xf32, #tpu.memory_space<vmem>>, %arg6: memref<8x304xbf16, #tpu.memory_space<vmem>>, %arg7: memref<8x1xf32, #tpu.memory_space<vmem>>, %arg8: memref<8x128xf32, #tpu.memory_space<vmem>>) attributes {dimension_semantics = [#tpu.dimension_semantics<parallel>], iteration_bounds = array<i64: 1>, scalar_prefetch = 0 : i64, scratch_operands = 0 : i64, tpu.core_type = #tpu.core_type<tc>, window_params = [{transform_indices = @transform_0, window_bounds = array<i64: 16, 128>}, {pipeline_mode = #tpu.pipeline_mode<synchronous>, transform_indices = @transform_1, window_bounds = array<i64: 400, 16>}, {pipeline_mode = #tpu.pipeline_mode<synchronous>, transform_indices = @transform_2, window_bounds = array<i64: 400, 1>}, {pipeline_mode = #tpu.pipeline_mode<synchronous>, transform_indices = @transform_3, window_bounds = array<i64: 304, 400>}, {pipeline_mode = #tpu.pipeline_mode<synchronous>, transform_indices = @transform_4, window_bounds = array<i64: 304, 1>}, {pipeline_mode = #tpu.pipeline_mode<synchronous>, transform_indices = @transform_5, window_bounds = array<i64: 8, 304>}, {pipeline_mode = #tpu.pipeline_mode<synchronous>, transform_indices = @transform_6, window_bounds = array<i64: 8, 1>}, {transform_indices = @transform_7, window_bounds = array<i64: 8, 128>}]} {
    %c0 = arith.constant 0 : index
    %c0_0 = arith.constant 0 : index
    %0 = vector.load %arg1[%c0, %c0_0] : memref<16x128xbf16, #tpu.memory_space<vmem>>, vector<16x128xbf16>
    %c0_1 = arith.constant 0 : index
    %c0_2 = arith.constant 0 : index
    %1 = vector.load %arg2[%c0_1, %c0_2] : memref<400x16xbf16, #tpu.memory_space<vmem>>, vector<400x16xbf16>
    %cst = arith.constant dense<0.000000e+00> : vector<400x128xf32>
    %2 = tpu.matmul %1, %0, %cst {dimension_numbers = #tpu.dot_dimension_numbers<[1], [0], [0], [1], [0, 0, 1, 1], [], []>} : vector<400x16xbf16>, vector<16x128xbf16>, vector<400x128xf32> -> vector<400x128xf32>
    %c0_3 = arith.constant 0 : index
    %c0_4 = arith.constant 0 : index
    %3 = vector.load %arg3[%c0_3, %c0_4] : memref<400x1xf32, #tpu.memory_space<vmem>>, vector<400x1xf32>
    %4 = vector.broadcast %3 : vector<400x1xf32> to vector<400x128xf32>
    %5 = arith.addf %2, %4 : vector<400x128xf32>
    %cst_5 = arith.constant 0.000000e+00 : f32
    %6 = vector.broadcast %cst_5 : f32 to vector<400x128xf32>
    %7 = arith.maximumf %5, %6 : vector<400x128xf32>
    %c0_6 = arith.constant 0 : index
    %c0_7 = arith.constant 0 : index
    %8 = vector.load %arg4[%c0_6, %c0_7] : memref<304x400xbf16, #tpu.memory_space<vmem>>, vector<304x400xbf16>
    %9 = arith.truncf %7 : vector<400x128xf32> to vector<400x128xbf16>
    %cst_8 = arith.constant dense<0.000000e+00> : vector<304x128xf32>
    %10 = tpu.matmul %8, %9, %cst_8 {dimension_numbers = #tpu.dot_dimension_numbers<[1], [0], [0], [1], [0, 0, 1, 1], [], []>} : vector<304x400xbf16>, vector<400x128xbf16>, vector<304x128xf32> -> vector<304x128xf32>
    %c0_9 = arith.constant 0 : index
    %c0_10 = arith.constant 0 : index
    %11 = vector.load %arg5[%c0_9, %c0_10] : memref<304x1xf32, #tpu.memory_space<vmem>>, vector<304x1xf32>
    %12 = vector.broadcast %11 : vector<304x1xf32> to vector<304x128xf32>
    %13 = arith.addf %10, %12 : vector<304x128xf32>
    %cst_11 = arith.constant 0.000000e+00 : f32
    %14 = vector.broadcast %cst_11 : f32 to vector<304x128xf32>
    %15 = arith.maximumf %13, %14 : vector<304x128xf32>
    %c0_12 = arith.constant 0 : index
    %c0_13 = arith.constant 0 : index
    %16 = vector.load %arg6[%c0_12, %c0_13] : memref<8x304xbf16, #tpu.memory_space<vmem>>, vector<8x304xbf16>
    %17 = arith.truncf %15 : vector<304x128xf32> to vector<304x128xbf16>
    %cst_14 = arith.constant dense<0.000000e+00> : vector<8x128xf32>
    %18 = tpu.matmul %16, %17, %cst_14 {dimension_numbers = #tpu.dot_dimension_numbers<[1], [0], [0], [1], [0, 0, 1, 1], [], []>} : vector<8x304xbf16>, vector<304x128xbf16>, vector<8x128xf32> -> vector<8x128xf32>
    %c0_15 = arith.constant 0 : index
    %c0_16 = arith.constant 0 : index
    %19 = vector.load %arg7[%c0_15, %c0_16] : memref<8x1xf32, #tpu.memory_space<vmem>>, vector<8x1xf32>
    %20 = vector.broadcast %19 : vector<8x1xf32> to vector<8x128xf32>
    %21 = arith.addf %18, %20 : vector<8x128xf32>
    %22 = math.tanh %21 : vector<8x128xf32>
    %c0_17 = arith.constant 0 : index
    %c0_18 = arith.constant 0 : index
    %23 = vector.load %arg8[%c0_17, %c0_18] : memref<8x128xf32, #tpu.memory_space<vmem>>, vector<8x128xf32>
    tpu.vector_store %arg8[%c0_17, %c0_18], %22 {strides = array<i32>} : memref<8x128xf32, #tpu.memory_space<vmem>>, vector<8x128xf32>,
    return
  }
  func.func @transform_0(%arg0: i32) -> (i32, i32) {
    %c0_i32 = arith.constant 0 : i32
    %c0_i32_0 = arith.constant 0 : i32
    return %c0_i32, %arg0 : i32, i32
  }
  func.func @transform_1(%arg0: i32) -> (i32, i32) {
    %c0_i32 = arith.constant 0 : i32
    %c0_i32_0 = arith.constant 0 : i32
    %c0_i32_1 = arith.constant 0 : i32
    return %c0_i32, %c0_i32_0 : i32, i32
  }
  func.func @transform_2(%arg0: i32) -> (i32, i32) {
    %c0_i32 = arith.constant 0 : i32
    %c0_i32_0 = arith.constant 0 : i32
    %c0_i32_1 = arith.constant 0 : i32
    return %c0_i32, %c0_i32_0 : i32, i32
  }
  func.func @transform_3(%arg0: i32) -> (i32, i32) {
    %c0_i32 = arith.constant 0 : i32
    %c0_i32_0 = arith.constant 0 : i32
    %c0_i32_1 = arith.constant 0 : i32
    return %c0_i32, %c0_i32_0 : i32, i32
  }
  func.func @transform_4(%arg0: i32) -> (i32, i32) {
    %c0_i32 = arith.constant 0 : i32
    %c0_i32_0 = arith.constant 0 : i32
    %c0_i32_1 = arith.constant 0 : i32
    return %c0_i32, %c0_i32_0 : i32, i32
  }
  func.func @transform_5(%arg0: i32) -> (i32, i32) {
    %c0_i32 = arith.constant 0 : i32
    %c0_i32_0 = arith.constant 0 : i32
    %c0_i32_1 = arith.constant 0 : i32
    return %c0_i32, %c0_i32_0 : i32, i32
  }
  func.func @transform_6(%arg0: i32) -> (i32, i32) {
    %c0_i32 = arith.constant 0 : i32
    %c0_i32_0 = arith.constant 0 : i32
    %c0_i32_1 = arith.constant 0 : i32
    return %c0_i32, %c0_i32_0 : i32, i32
  }
  func.func @transform_7(%arg0: i32) -> (i32, i32) {
    %c0_i32 = arith.constant 0 : i32
    %c0_i32_0 = arith.constant 0 : i32
    return %c0_i32, %arg0 : i32, i32
  }
}

</mosaic_0001>

<bundles_post_ra>
// kernel: tpu_custom_call.1
= control target key start
LH: loop header
LB: loop body
LE: loop exit
PB: predicated region body
PF: predicated region fallthrough
CT: control target
= control target key end

     0   :  { %v3751_v2 = vmov 0   ;;  %v3749_v4 = vmov 0.0   ;;  %vm2653_vm0 = vmmov 0   ;;  %vm511_vm1 = vcmask 130048   ;;  %s3741_s0 = inlined_call_operand.vmem [shape: bf16[16,128], index: 0, kind: input, shape index: {}]   ;;  %s3742_s1 = inlined_call_operand.vmem [shape: bf16[400,16], index: 1, kind: input, shape index: {}]   ;;  %s3743_s2 = inlined_call_operand.vmem [shape: f32[400,1], index: 2, kind: input, shape index: {}]   ;;  %s3744_s3 = inlined_call_operand.vmem [shape: bf16[304,400], index: 3, kind: input, shape index: {}]   ;;  %s3745_s4 = inlined_call_operand.vmem [shape: f32[304,1], index: 4, kind: input, shape index: {}]   ;;  %s3746_s5 = inlined_call_operand.vmem [shape: bf16[8,304], index: 5, kind: input, shape index: {}]   ;;  %s3747_s6 = inlined_call_operand.vmem [shape: f32[8,1], index: 6, kind: input, shape index: {}]   ;;  %s3748_s7 = inlined_call_operand.hbm [shape: f32[8,128], index: 7, kind: output, shape index: {}]  }
   0x1   :  { %v94_v0 = vld [vmem:[%s3743_s2 + $0x70] sm:$0xff]  ;;  %v92_v1 = vld [vmem:[%s3743_s2 + $0x60] sm:$0xff]  ;;  %2483 = vset.pattern.permute.xlu1 %v3751_v2  ;;  %2482 = vset.pattern.permute.xlu0 %v3751_v2  ;;  %v95_v5 = vld [vmem:[%s3743_s2 + $0x78] sm:$0xff] }
   0x2   :  { %v2484_v3 = vld [vmem:[%s3741_s0] sm:$0xff]   ;;  %2364 = vmatprep.subr.bf16.mxu0 %v3749_v4  ;;  %2476 = vmatprep.subr.bf16.mxu1 %v3749_v4  ;;  %v93_v6 = vld [vmem:[%s3743_s2 + $0x68] sm:$0xff]  ;;  %v2486_v8 = vld [vmem:[%s3742_s1 + $0x70] sm:$0xff]  }
   0x3   :  { %202 = vperm.xlu0 %2482, %v94_v0   ;;  %192 = vperm.xlu1 %2483, %v92_v1   ;;  %v2485_v7 = vld [vmem:[%s3742_s1] sm:$0xff]   ;;  %v91_v9 = vld [vmem:[%s3743_s2 + $0x58] sm:$0xff]  ;;  %v90_v10 = vld [vmem:[%s3743_s2 + $0x50] sm:$0xff] }
   0x4   :  { %2365 = vmatpush3.bf16.msra.mxu0 %v2484_v3  ;;  %2477 = vmatpush3.bf16.msra.mxu1 %v2484_v3  ;;  %v89_v11 = vld [vmem:[%s3743_s2 + $0x48] sm:$0xff]  ;;  %v88_v12 = vld [vmem:[%s3743_s2 + $0x40] sm:$0xff]  ;;  %v2488_v14 = vld [vmem:[%s3742_s1 + $0x78] sm:$0xff]  }
   0x5   :  { %2366 = vmatprep.mubr.msk.bf16.mxu0 %vm2653_vm0, %v3749_v4  ;;  %2422 = vmatprep.mubr.msk.bf16.mxu1 %vm2653_vm0, %v3749_v4  ;;  %v2487_v13 = vld [vmem:[%s3742_s1 + $0x8] sm:$0xff]   ;;  %v87_v15 = vld [vmem:[%s3743_s2 + $0x38] sm:$0xff]  ;;  %v86_v16 = vld [vmem:[%s3743_s2 + $0x30] sm:$0xff] }
   0x6   :  { %1617 = vmatprep.subr.bf16.mxu1 %v3751_v2  ;;  %1802 = vmatprep.subr.bf16.mxu0 %v3751_v2  ;;  %v85_v17 = vld [vmem:[%s3743_s2 + $0x28] sm:$0xff]  ;;  %v84_v18 = vld [vmem:[%s3743_s2 + $0x20] sm:$0xff]  ;;  %v2489_v19 = vld [vmem:[%s3742_s1 + $0x10] sm:$0xff]  }
   0x7   :  { %207 = vperm.xlu0 %2482, %v95_v5   ;;  %197 = vperm.xlu1 %2483, %v93_v6   ;;  %v2490_v20 = vld [vmem:[%s3742_s1 + $0x80] sm:$0xff]   ;;  %v83_v21 = vld [vmem:[%s3743_s2 + $0x18] sm:$0xff]  ;;  %v82_v22 = vld [vmem:[%s3743_s2 + $0x10] sm:$0xff] }
   0x8   :  { %2367 = vmatmul.mubr.msk.bf16.vlgmr.msra.gmra.mxu0 %vm511_vm1, %v2485_v7  ;;  %2423 = vmatmul.mubr.msk.bf16.vlgmr.msra.gmra.mxu1 %vm511_vm1, %v2486_v8  ;;  %v81_v23 = vld [vmem:[%s3743_s2 + $0x8] sm:$0xff]  ;;  %v80_v24 = vld [vmem:[%s3743_s2] sm:$0xff]  ;;  %v2491_v25 = vld [vmem:[%s3742_s1 + $0x18] sm:$0xff]  }
   0x9   :  { %2370 = vmatprep.mubr.msk.bf16.mxu0 %vm2653_vm0, %v3749_v4  ;;  %2426 = vmatprep.mubr.msk.bf16.mxu1 %vm2653_vm0, %v3749_v4  ;;  %v2492_v26 = vld [vmem:[%s3742_s1 + $0x88] sm:$0xff]   ;;  %v127_v27 = vld [vmem:[%s3743_s2 + $0x178] sm:$0xff]  ;;  %v126_v28 = vld [vmem:[%s3743_s2 + $0x170] sm:$0xff] }
   0xa   :  { %v111_v29 = vld [vmem:[%s3743_s2 + $0xf8] sm:$0xff]  ;;  %v110_v30 = vld [vmem:[%s3743_s2 + $0xf0] sm:$0xff]  ;;  %v2493_v31 = vld [vmem:[%s3742_s1 + $0x20] sm:$0xff]  }
   0xb   :  { %187 = vperm.xlu1 %2483, %v91_v9   ;;  %182 = vperm.xlu0 %2482, %v90_v10   ;;  %v2494_v32 = vld [vmem:[%s3742_s1 + $0x90] sm:$0xff]   ;;  %v125_v33 = vld [vmem:[%s3743_s2 + $0x168] sm:$0xff]  ;;  %v124_v34 = vld [vmem:[%s3743_s2 + $0x160] sm:$0xff] }
   0xc   :  { %v109_v35 = vld [vmem:[%s3743_s2 + $0xe8] sm:$0xff]  ;;  %v108_v36 = vld [vmem:[%s3743_s2 + $0xe0] sm:$0xff]  ;;  %v2496_v38 = vld [vmem:[%s3742_s1 + $0x98] sm:$0xff]  }
   0xd   :  { %v2495_v37 = vld [vmem:[%s3742_s1 + $0x28] sm:$0xff]   ;;  %v123_v39 = vld [vmem:[%s3743_s2 + $0x158] sm:$0xff]  ;;  %v122_v40 = vld [vmem:[%s3743_s2 + $0x150] sm:$0xff] }
   0xe   :  { %v107_v41 = vld [vmem:[%s3743_s2 + $0xd8] sm:$0xff]  ;;  %v106_v42 = vld [vmem:[%s3743_s2 + $0xd0] sm:$0xff]  ;;  %v2498_v44 = vld [vmem:[%s3742_s1 + $0xa0] sm:$0xff]  }
   0xf   :  { %177 = vperm.xlu1 %2483, %v89_v11   ;;  %172 = vperm.xlu0 %2482, %v88_v12   ;;  %v2497_v43 = vld [vmem:[%s3742_s1 + $0x30] sm:$0xff]   ;;  %v121_v45 = vld [vmem:[%s3743_s2 + $0x148] sm:$0xff]  ;;  %v120_v46 = vld [vmem:[%s3743_s2 + $0x140] sm:$0xff] }
  0x10   :  { %2371 = vmatmul.mubr.msk.bf16.gmra.mxu0 %vm511_vm1, %v2487_v13  ;;  %2427 = vmatmul.mubr.msk.bf16.gmra.mxu1 %vm511_vm1, %v2488_v14  ;;  %v105_v47 = vld [vmem:[%s3743_s2 + $0xc8] sm:$0xff]  ;;  %v104_v48 = vld [vmem:[%s3743_s2 + $0xc0] sm:$0xff]  ;;  %v2499_v49 = vld [vmem:[%s3742_s1 + $0x38] sm:$0xff]  }
  0x11   :  { %2374 = vmatprep.mubr.msk.bf16.mxu0 %vm2653_vm0, %v3749_v4  ;;  %2430 = vmatprep.mubr.msk.bf16.mxu1 %vm2653_vm0, %v3749_v4  ;;  %v2500_v50 = vld [vmem:[%s3742_s1 + $0xa8] sm:$0xff]   ;;  %v119_v51 = vld [vmem:[%s3743_s2 + $0x138] sm:$0xff]  ;;  %v118_v52 = vld [vmem:[%s3743_s2 + $0x130] sm:$0xff] }
  0x12   :  { %v103_v53 = vld [vmem:[%s3743_s2 + $0xb8] sm:$0xff]  ;;  %v102_v54 = vld [vmem:[%s3743_s2 + $0xb0] sm:$0xff]  ;;  %v2501_v55 = vld [vmem:[%s3742_s1 + $0x40] sm:$0xff]  }
  0x13   :  { %167 = vperm.xlu1 %2483, %v87_v15   ;;  %162 = vperm.xlu0 %2482, %v86_v16   ;;  %v2502_v56 = vld [vmem:[%s3742_s1 + $0xb0] sm:$0xff]   ;;  %v117_v57 = vld [vmem:[%s3743_s2 + $0x128] sm:$0xff]  ;;  %v116_v58 = vld [vmem:[%s3743_s2 + $0x120] sm:$0xff] }
  0x14   :  { %v101_v59 = vld [vmem:[%s3743_s2 + $0xa8] sm:$0xff]  ;;  %v100_v60 = vld [vmem:[%s3743_s2 + $0xa0] sm:$0xff]  ;;  %v2504_v62 = vld [vmem:[%s3742_s1 + $0xb8] sm:$0xff]  }
  0x15   :  { %v2503_v61 = vld [vmem:[%s3742_s1 + $0x48] sm:$0xff]   ;;  %v115_v63 = vld [vmem:[%s3743_s2 + $0x118] sm:$0xff]  ;;  %v114_v0 = vld [vmem:[%s3743_s2 + $0x110] sm:$0xff] }
  0x17   :  { %157 = vperm.xlu1 %2483, %v85_v17   ;;  %152 = vperm.xlu0 %2482, %v84_v18  }
  0x18   :  { %2375 = vmatmul.mubr.msk.bf16.gmra.mxu0 %vm511_vm1, %v2489_v19  ;;  %2431 = vmatmul.mubr.msk.bf16.gmra.mxu1 %vm511_vm1, %v2490_v20 }
  0x19   :  { %2378 = vmatprep.mubr.msk.bf16.mxu0 %vm2653_vm0, %v3749_v4  ;;  %2434 = vmatprep.mubr.msk.bf16.mxu1 %vm2653_vm0, %v3749_v4 }
  0x1b   :  { %147 = vperm.xlu1 %2483, %v83_v21   ;;  %142 = vperm.xlu0 %2482, %v82_v22  }
  0x1f   :  { %137 = vperm.xlu1 %2483, %v81_v23   ;;  %132 = vperm.xlu0 %2482, %v80_v24  }
  0x20   :  { %2379 = vmatmul.mubr.msk.bf16.gmra.mxu0 %vm511_vm1, %v2491_v25  ;;  %2435 = vmatmul.mubr.msk.bf16.gmra.mxu1 %vm511_vm1, %v2492_v26 }
  0x21   :  { %2382 = vmatprep.mubr.msk.bf16.mxu0 %vm2653_vm0, %v3749_v4  ;;  %2438 = vmatprep.mubr.msk.bf16.mxu1 %vm2653_vm0, %v3749_v4 }
  0x23   :  { %367 = vperm.xlu1 %2483, %v127_v27   ;;  %362 = vperm.xlu0 %2482, %v126_v28  }
  0x27   :  { %287 = vperm.xlu1 %2483, %v111_v29   ;;  %282 = vperm.xlu0 %2482, %v110_v30  }
  0x28   :  { %2383 = vmatmul.mubr.msk.bf16.gmra.mxu0 %vm511_vm1, %v2493_v31  ;;  %2439 = vmatmul.mubr.msk.bf16.gmra.mxu1 %vm511_vm1, %v2494_v32 }
  0x29   :  { %2386 = vmatprep.mubr.msk.bf16.mxu0 %vm2653_vm0, %v3749_v4  ;;  %2442 = vmatprep.mubr.msk.bf16.mxu1 %vm2653_vm0, %v3749_v4 }
  0x2b   :  { %357 = vperm.xlu1 %2483, %v125_v33   ;;  %352 = vperm.xlu0 %2482, %v124_v34  }
  0x2f   :  { %277 = vperm.xlu1 %2483, %v109_v35   ;;  %272 = vperm.xlu0 %2482, %v108_v36  }
  0x30   :  { %2387 = vmatmul.mubr.msk.bf16.gmra.mxu0 %vm511_vm1, %v2495_v37  ;;  %2443 = vmatmul.mubr.msk.bf16.gmra.mxu1 %vm511_vm1, %v2496_v38 }
  0x31   :  { %2390 = vmatprep.mubr.msk.bf16.mxu0 %vm2653_vm0, %v3749_v4  ;;  %2446 = vmatprep.mubr.msk.bf16.mxu1 %vm2653_vm0, %v3749_v4 }
  0x33   :  { %347 = vperm.xlu1 %2483, %v123_v39   ;;  %342 = vperm.xlu0 %2482, %v122_v40  }
  0x37   :  { %267 = vperm.xlu1 %2483, %v107_v41   ;;  %262 = vperm.xlu0 %2482, %v106_v42  }
  0x38   :  { %2391 = vmatmul.mubr.msk.bf16.gmra.mxu0 %vm511_vm1, %v2497_v43  ;;  %2447 = vmatmul.mubr.msk.bf16.gmra.mxu1 %vm511_vm1, %v2498_v44 }
  0x39   :  { %2394 = vmatprep.mubr.msk.bf16.mxu0 %vm2653_vm0, %v3749_v4  ;;  %2450 = vmatprep.mubr.msk.bf16.mxu1 %vm2653_vm0, %v3749_v4 }
  0x3b   :  { %337 = vperm.xlu1 %2483, %v121_v45   ;;  %332 = vperm.xlu0 %2482, %v120_v46  }
  0x3f   :  { %257 = vperm.xlu1 %2483, %v105_v47   ;;  %252 = vperm.xlu0 %2482, %v104_v48  }
  0x40   :  { %2395 = vmatmul.mubr.msk.bf16.gmra.mxu0 %vm511_vm1, %v2499_v49  ;;  %2451 = vmatmul.mubr.msk.bf16.gmra.mxu1 %vm511_vm1, %v2500_v50 }
  0x41   :  { %2398 = vmatprep.mubr.msk.bf16.mxu0 %vm2653_vm0, %v3749_v4  ;;  %2454 = vmatprep.mubr.msk.bf16.mxu1 %vm2653_vm0, %v3749_v4 }
  0x43   :  { %327 = vperm.xlu1 %2483, %v119_v51   ;;  %322 = vperm.xlu0 %2482, %v118_v52  }
  0x47   :  { %247 = vperm.xlu1 %2483, %v103_v53   ;;  %242 = vperm.xlu0 %2482, %v102_v54  }
  0x48   :  { %2399 = vmatmul.mubr.msk.bf16.gmra.mxu0 %vm511_vm1, %v2501_v55  ;;  %2455 = vmatmul.mubr.msk.bf16.gmra.mxu1 %vm511_vm1, %v2502_v56 }
  0x49   :  { %2402 = vmatprep.mubr.msk.bf16.mxu0 %vm2653_vm0, %v3749_v4  ;;  %2458 = vmatprep.mubr.msk.bf16.mxu1 %vm2653_vm0, %v3749_v4 }
  0x4b   :  { %317 = vperm.xlu1 %2483, %v117_v57   ;;  %312 = vperm.xlu0 %2482, %v116_v58  }
  0x4f   :  { %237 = vperm.xlu1 %2483, %v101_v59   ;;  %232 = vperm.xlu0 %2482, %v100_v60  }
  0x50   :  { %2403 = vmatmul.mubr.msk.bf16.gmra.mxu0 %vm511_vm1, %v2503_v61  ;;  %2459 = vmatmul.mubr.msk.bf16.gmra.mxu1 %vm511_vm1, %v2504_v62 }
  0x51   :  { %2406 = vmatprep.mubr.msk.bf16.mxu0 %vm2653_vm0, %v3749_v4  ;;  %2462 = vmatprep.mubr.msk.bf16.mxu1 %vm2653_vm0, %v3749_v4 }
  0x52   :  { %12 = vsyncpa [#allocation3], 0  ;;  %v99_v1 = vld [vmem:[%s3743_s2 + $0x98] sm:$0xff]  ;;  %v98_v3 = vld [vmem:[%s3743_s2 + $0x90] sm:$0xff]  ;;  %vm2062_vm2 = vcmask 392192   ;;  %s2654_s20 = smov [#allocation2]  }
  0x53   :  { %307 = vperm.xlu1 %2483, %v115_v63   ;;  %302 = vperm.xlu0 %2482, %v114_v0   ;;  %v2505_v5 = vld [vmem:[%s3742_s1 + $0x50] sm:$0xff]   ;;  %v2506_v6 = vld [vmem:[%s3742_s1 + $0xc0] sm:$0xff]   ;;  %v113_v7 = vld [vmem:[%s3743_s2 + $0x108] sm:$0xff]  ;;  %s2154_s21 = sshll.u32 %s2654_s20, 4  ;;  %s2155_s21 = int_to_ptr.vmem [resolvable:$true] %s2154_s21 }
  0x54   :  { %v112_v8 = vld [vmem:[%s3743_s2 + $0x100] sm:$0xff]  ;;  %v97_v9 = vld [vmem:[%s3743_s2 + $0x88] sm:$0xff]  ;;  %v2507_v11 = vld [vmem:[%s3742_s1 + $0x58] sm:$0xff]   ;;  %p2634_p1 = scmp.lt.s32.totalorder %s2155_s21, %s2155_s21 }
  0x55   :  { %v96_v10 = vld [vmem:[%s3743_s2 + $0x80] sm:$0xff]  ;;  %v129_v12 = vld [vmem:[%s3743_s2 + $0x188] sm:$0xff]  ;;  %v1002_v14 = vld [vmem:[%s3745_s4 + $0xf8] sm:$0xff] }
  0x56   :  { %v128_v13 = vld [vmem:[%s3743_s2 + $0x180] sm:$0xff]  ;;  %v1001_v15 = vld [vmem:[%s3745_s4 + $0xf0] sm:$0xff]  ;;  %v986_v17 = vld [vmem:[%s3745_s4 + $0x78] sm:$0xff] }
  0x57   :  { %227 = vperm.xlu1 %2483, %v99_v1   ;;  %222 = vperm.xlu0 %2482, %v98_v3   ;;  %v2508_v16 = vld [vmem:[%s3742_s1 + $0x60] sm:$0xff]   ;;  %v985_v18 = vld [vmem:[%s3745_s4 + $0x70] sm:$0xff]  ;;  %v1000_v19 = vld [vmem:[%s3745_s4 + $0xe8] sm:$0xff] }
  0x58   :  { %2407 = vmatmul.mubr.msk.bf16.gmra.mxu0 %vm511_vm1, %v2505_v5  ;;  %2463 = vmatmul.mubr.msk.bf16.gmra.mxu1 %vm511_vm1, %v2506_v6  ;;  %v999_v20 = vld [vmem:[%s3745_s4 + $0xe0] sm:$0xff]  ;;  %v2509_v21 = vld [vmem:[%s3742_s1 + $0x68] sm:$0xff]   ;;  %v998_v24 = vld [vmem:[%s3745_s4 + $0xd8] sm:$0xff] }
  0x59   :  { %2410 = vmatprep.mubr.msk.bf16.mxu0 %vm2653_vm0, %v3749_v4  ;;  %v984_v22 = vld [vmem:[%s3745_s4 + $0x68] sm:$0xff]  ;;  %v983_v23 = vld [vmem:[%s3745_s4 + $0x60] sm:$0xff]  ;;  %v997_v25 = vld [vmem:[%s3745_s4 + $0xd0] sm:$0xff] }
  0x5a   :  { %v982_v26 = vld [vmem:[%s3745_s4 + $0x58] sm:$0xff]  ;;  %v981_v27 = vld [vmem:[%s3745_s4 + $0x50] sm:$0xff]  ;;  %v996_v28 = vld [vmem:[%s3745_s4 + $0xc8] sm:$0xff] }
  0x5b   :  { %297 = vperm.xlu1 %2483, %v113_v7   ;;  %292 = vperm.xlu0 %2482, %v112_v8   ;;  %v995_v29 = vld [vmem:[%s3745_s4 + $0xc0] sm:$0xff]  ;;  %v980_v32 = vld [vmem:[%s3745_s4 + $0x48] sm:$0xff]  ;;  %v994_v36 = vld [vmem:[%s3745_s4 + $0xb8] sm:$0xff] }
  0x5c   :  { %v979_v33 = vld [vmem:[%s3745_s4 + $0x40] sm:$0xff]  ;;  %v993_v37 = vld [vmem:[%s3745_s4 + $0xb0] sm:$0xff]  ;;  %v978_v40 = vld [vmem:[%s3745_s4 + $0x38] sm:$0xff] }
  0x5d   :  { %v977_v41 = vld [vmem:[%s3745_s4 + $0x30] sm:$0xff]  ;;  %v992_v44 = vld [vmem:[%s3745_s4 + $0xa8] sm:$0xff]  ;;  %v991_v45 = vld [vmem:[%s3745_s4 + $0xa0] sm:$0xff] }
  0x5e   :  { %v976_v48 = vld [vmem:[%s3745_s4 + $0x28] sm:$0xff]  ;;  %v975_v49 = vld [vmem:[%s3745_s4 + $0x20] sm:$0xff]  ;;  %v990_v52 = vld [vmem:[%s3745_s4 + $0x98] sm:$0xff] }
  0x5f   :  { %217 = vperm.xlu1 %2483, %v97_v9   ;;  %212 = vperm.xlu0 %2482, %v96_v10   ;;  %v989_v53 = vld [vmem:[%s3745_s4 + $0x90] sm:$0xff]  ;;  %v974_v56 = vld [vmem:[%s3745_s4 + $0x18] sm:$0xff]  ;;  %v988_v60 = vld [vmem:[%s3745_s4 + $0x88] sm:$0xff] }
  0x60   :  { %2411 = vmatmul.mubr.msk.bf16.gmra.mxu0 %vm511_vm1, %v2507_v11  ;;  %v973_v57 = vld [vmem:[%s3745_s4 + $0x10] sm:$0xff]  ;;  %v987_v61 = vld [vmem:[%s3745_s4 + $0x80] sm:$0xff]  ;;  %v972_v0 = vld [vmem:[%s3745_s4 + $0x8] sm:$0xff] }
  0x61   :  { %2414 = vmatprep.mubr.msk.bf16.mxu0 %vm2653_vm0, %v3749_v4  ;;  %v971_v1 = vld [vmem:[%s3745_s4] sm:$0xff]  ;;  %v1008_v6 = vld [vmem:[%s3745_s4 + $0x128] sm:$0xff]  ;;  %v1006_v10 = vld [vmem:[%s3745_s4 + $0x118] sm:$0xff] }
  0x62   :  { %v1007_v7 = vld [vmem:[%s3745_s4 + $0x120] sm:$0xff]  ;;  %v1005_v11 = vld [vmem:[%s3745_s4 + $0x110] sm:$0xff] }
  0x63   :  { %377 = vperm.xlu1 %2483, %v129_v12   ;;  %372 = vperm.xlu0 %2482, %v128_v13  }
  0x67   :  { %1166 = vperm.xlu1 %2483, %v1002_v14   ;;  %1161 = vperm.xlu0 %2482, %v1001_v15   ;;  %v1004_v14 = vld [vmem:[%s3745_s4 + $0x108] sm:$0xff]  ;;  %v1003_v15 = vld [vmem:[%s3745_s4 + $0x100] sm:$0xff] }
  0x68   :  { %2415 = vmatmul.mubr.msk.bf16.gmra.mxu0 %vm511_vm1, %v2508_v16 }
  0x69   :  { %2418 = vmatprep.mubr.msk.bf16.mxu0 %vm2653_vm0, %v3749_v4 }
  0x6b   :  { %1086 = vperm.xlu1 %2483, %v986_v17   ;;  %1081 = vperm.xlu0 %2482, %v985_v18   ;;  %v2046_v18 = vld [vmem:[%s3747_s6] sm:$0xff] }
  0x6f   :  { %1156 = vperm.xlu1 %2483, %v1000_v19   ;;  %1151 = vperm.xlu0 %2482, %v999_v20  }
  0x70   :  { %2419 = vmatmul.mubr.msk.bf16.gmra.mxu0 %vm511_vm1, %v2509_v21 }
  0x73   :  { %1076 = vperm.xlu1 %2483, %v984_v22   ;;  %1071 = vperm.xlu0 %2482, %v983_v23  }
  0x77   :  { %1146 = vperm.xlu1 %2483, %v998_v24   ;;  %1141 = vperm.xlu0 %2482, %v997_v25  }
  0x7b   :  { %1066 = vperm.xlu1 %2483, %v982_v26   ;;  %1061 = vperm.xlu0 %2482, %v981_v27  }
  0x7e   :  { %v3046_v30 = vpop.permute.xlu0 %202  ;;  %v3048_v31 = vpop.permute.xlu1 %192 }
  0x7f   :  { %1136 = vperm.xlu1 %2483, %v996_v28   ;;  %1131 = vperm.xlu0 %2482, %v995_v29  }
  0x82   :  { %v3056_v34 = vpop.permute.xlu0 %207  ;;  %v3058_v35 = vpop.permute.xlu1 %197 }
  0x83   :  { %1056 = vperm.xlu1 %2483, %v980_v32   ;;  %1051 = vperm.xlu0 %2482, %v979_v33  }
  0x86   :  { %v3066_v38 = vpop.permute.xlu1 %187  ;;  %v3068_v39 = vpop.permute.xlu0 %182 }
  0x87   :  { %1126 = vperm.xlu1 %2483, %v994_v36   ;;  %1121 = vperm.xlu0 %2482, %v993_v37  }
  0x8a   :  { %v3076_v42 = vpop.permute.xlu1 %177  ;;  %v3078_v43 = vpop.permute.xlu0 %172 }
  0x8b   :  { %1046 = vperm.xlu1 %2483, %v978_v40   ;;  %1041 = vperm.xlu0 %2482, %v977_v41  }
  0x8e   :  { %v3086_v46 = vpop.permute.xlu1 %167  ;;  %v3088_v47 = vpop.permute.xlu0 %162 }
  0x8f   :  { %1116 = vperm.xlu1 %2483, %v992_v44   ;;  %1111 = vperm.xlu0 %2482, %v991_v45  }
  0x92   :  { %v3096_v50 = vpop.permute.xlu1 %157  ;;  %v3098_v51 = vpop.permute.xlu0 %152 }
  0x93   :  { %1036 = vperm.xlu1 %2483, %v976_v48   ;;  %1031 = vperm.xlu0 %2482, %v975_v49   ;;  %v2512_v49 = vld [vmem:[%s3744_s3 + $0xc] ss:$16 sps:$4 sm:$0xff]  }
  0x94   :  { %2289 = vmatprep.mubr.msk.bf16.mxu0 %vm511_vm1, %v2512_v49 }
  0x96   :  { %v3106_v54 = vpop.permute.xlu1 %147  ;;  %v3108_v55 = vpop.permute.xlu0 %142 }
  0x97   :  { %1106 = vperm.xlu1 %2483, %v990_v52   ;;  %1101 = vperm.xlu0 %2482, %v989_v53  }
  0x9a   :  { %v138_v58 = vpop.permute.xlu1 %137  ;;  %v133_v59 = vpop.permute.xlu0 %132 }
  0x9b   :  { %1026 = vperm.xlu1 %2483, %v974_v56   ;;  %1021 = vperm.xlu0 %2482, %v973_v57  }
  0x9e   :  { %v3122_v62 = vpop.permute.xlu1 %367  ;;  %v3124_v63 = vpop.permute.xlu0 %362 }
  0x9f   :  { %1096 = vperm.xlu1 %2483, %v988_v60   ;;  %1091 = vperm.xlu0 %2482, %v987_v61  }
  0xa2   :  { %v3132_v3 = vpop.permute.xlu1 %287  ;;  %v283_v5 = vpop.permute.xlu0 %282 }
  0xa3   :  { %1016 = vperm.xlu1 %2483, %v972_v0   ;;  %1011 = vperm.xlu0 %2482, %v971_v1  }
  0xa6   :  { %v3140_v8 = vpop.permute.xlu1 %357  ;;  %v3142_v9 = vpop.permute.xlu0 %352 }
  0xa7   :  { %1196 = vperm.xlu1 %2483, %v1008_v6   ;;  %1191 = vperm.xlu0 %2482, %v1007_v7  }
  0xaa   :  { %v278_v12 = vpop.permute.xlu1 %277  ;;  %v273_v13 = vpop.permute.xlu0 %272 }
  0xab   :  { %1186 = vperm.xlu1 %2483, %v1006_v10   ;;  %1181 = vperm.xlu0 %2482, %v1005_v11   ;;  %v2515_v11 = vld [vmem:[%s3744_s3 + $0x4] ss:$16 sps:$4 sm:$0xff]  }
  0xac   :  { %1649 = vmatprep.mubr.bf16.mxu1 %v2515_v11 }
  0xae   :  { %v3156_v16 = vpop.permute.xlu1 %347  ;;  %v3158_v17 = vpop.permute.xlu0 %342 }
  0xaf   :  { %1176 = vperm.xlu1 %2483, %v1004_v14   ;;  %1171 = vperm.xlu0 %2482, %v1003_v15  }
  0xb2   :  { %v3163_v19 = vpop.permute.xlu1 %267  ;;  %v3165_v20 = vpop.permute.xlu0 %262 }
  0xb3   :  { %3753 = vst [vmem:[#allocation5_spill] sm:$0xff] %v3163_v19  ;;  %2049 = vperm.xlu0 %2482, %v2046_v18  }
  0xb6   :  { %v3167_v21 = vpop.permute.xlu1 %337  ;;  %v3169_v22 = vpop.permute.xlu0 %332 }
  0xba   :  { %v3171_v23 = vpop.permute.xlu1 %257  ;;  %v3173_v24 = vpop.permute.xlu0 %252 }
  0xbb   :  { %3754 = vst [vmem:[#allocation6_spill] sm:$0xff] %v3171_v23  ;;  %3755 = vst [vmem:[#allocation7_spill] sm:$0xff] %v3173_v24 }
  0xbe   :  { %v3175_v25 = vpop.permute.xlu1 %327  ;;  %v3177_v26 = vpop.permute.xlu0 %322 }
  0xc2   :  { %v3179_v27 = vpop.permute.xlu1 %247  ;;  %v3181_v28 = vpop.permute.xlu0 %242 }
  0xc3   :  { %3756 = vst [vmem:[#allocation8_spill] sm:$0xff] %v3179_v27  ;;  %3757 = vst [vmem:[#allocation9_spill] sm:$0xff] %v3181_v28 }
  0xc6   :  { %v3183_v29 = vpop.permute.xlu1 %317  ;;  %v3185_v32 = vpop.permute.xlu0 %312 }
  0xc8   :  { %v621_v33 = vpop.f32.mrf.mxu0  ;;  %v733_v36 = vpop.f32.mrf.mxu1 }
  0xc9   :  { %v734_v37 = vadd.f32 %v733_v36, %v273_v13  ;;  %v622_v44 = vadd.f32 %v621_v33, %v133_v59 }
  0xca   :  { %v2368_v40 = vpop.f32.mrf.mxu0  ;;  %v2424_v41 = vpop.f32.mrf.mxu1 }
  0xcb   :  { %v3187_v45 = vpop.permute.xlu1 %237  ;;  %v3189_v48 = vpop.permute.xlu0 %232  ;;  %v848_v56 = vmax.f32 %v734_v37, 0.0  ;;  %v820_v1 = vmax.f32 %v622_v44, 0.0 }
  0xcc   :  { %3758 = vst [vmem:[#allocation10_spill] sm:$0xff] %v3187_v45  ;;  %3759 = vst [vmem:[#allocation11_spill] sm:$0xff] %v3189_v48  ;;  %v624_v52 = vpop.f32.mrf.mxu0  ;;  %v736_v53 = vpop.f32.mrf.mxu1 }
  0xcd   :  { %v625_v57 = vadd.f32 %v624_v52, %v138_v58  ;;  %v737_v60 = vadd.f32 %v736_v53, %v278_v12 }
  0xce   :  { %v2369_v61 = vpop.f32.mrf.mxu0  ;;  %v2425_v0 = vpop.f32.mrf.mxu1 }
  0xcf   :  { %v821_v6 = vmax.f32 %v625_v57, 0.0  ;;  %v849_v59 = vmax.f32 %v737_v60, 0.0  ;;  %v308_v7 = vpop.permute.xlu1 %307  ;;  %v303_v10 = vpop.permute.xlu0 %302 }
  0xd0   :  { %v629_v13 = vpop.f32.mrf.mxu0  ;;  %v741_v14 = vpop.f32.mrf.mxu1 }
  0xd1   :  { %v3198_v15 = vpack.c.bf16 %v821_v6, %v820_v1  ;;  %v3200_v18 = vpack.c.bf16 %v849_v59, %v848_v56  ;;  %v742_v58 = vadd.f32 %v741_v14, %v283_v5  ;;  %v630_v36 = vadd.f32 %v629_v13, %v3108_v55 }
  0xd2   :  { %v2372_v12 = vpop.f32.mrf.mxu0  ;;  %v2428_v33 = vpop.f32.mrf.mxu1 }
  0xd3   :  { %v3203_v37 = vpop.permute.xlu0 %222  ;;  %v850_v44 = vmax.f32 %v742_v58, 0.0  ;;  %v3205_v49 = vpop.permute.xlu1 %227  ;;  %v822_v60 = vmax.f32 %v630_v36, 0.0 }
  0xd4   :  { %3760 = vst [vmem:[#allocation12_spill] sm:$0xff] %v3203_v37  ;;  %v632_v40 = vpop.f32.mrf.mxu0  ;;  %v744_v41 = vpop.f32.mrf.mxu1  ;;  %3761 = vst [vmem:[#allocation13_spill] sm:$0xff] %v3205_v49 }
  0xd5   :  { %v633_v52 = vadd.f32 %v632_v40, %v3106_v54  ;;  %v745_v53 = vadd.f32 %v744_v41, %v3132_v3 }
  0xd6   :  { %v2373_v57 = vpop.f32.mrf.mxu0  ;;  %v2429_v56 = vpop.f32.mrf.mxu1 }
  0xd7   :  { %v823_v5 = vmax.f32 %v633_v52, 0.0  ;;  %v851_v61 = vmax.f32 %v745_v53, 0.0  ;;  %v293_v0 = vpop.permute.xlu0 %292  ;;  %v298_v58 = vpop.permute.xlu1 %297 }
  0xd8   :  { %v3209_v1 = vpop.f32.mrf.mxu0  ;;  %v749_v55 = vpop.f32.mrf.mxu1 }
  0xd9   :  { %v3211_v6 = vpack.c.bf16 %v823_v5, %v822_v60  ;;  %v3213_v59 = vpack.c.bf16 %v851_v61, %v850_v44  ;;  %v750_v11 = vadd.f32 %v749_v55, %v293_v0 }
  0xda   :  { %v2376_v13 = vpop.f32.mrf.mxu0  ;;  %v2432_v14 = vpop.f32.mrf.mxu1 }
  0xdb   :  { %v852_v12 = vmax.f32 %v750_v11, 0.0 }
  0xdc   :  { %v3215_v54 = vpop.f32.mrf.mxu0  ;;  %v752_v3 = vpop.f32.mrf.mxu1 }
  0xdd   :  { %v753_v33 = vadd.f32 %v752_v3, %v298_v58 }
  0xde   :  { %v2377_v36 = vpop.f32.mrf.mxu0  ;;  %v2433_v40 = vpop.f32.mrf.mxu1 }
  0xdf   :  { %v853_v41 = vmax.f32 %v753_v33, 0.0 }
  0xe0   :  { %v3217_v52 = vpop.f32.mrf.mxu0  ;;  %v757_v53 = vpop.f32.mrf.mxu1 }
  0xe1   :  { %v3219_v57 = vpack.c.bf16 %v853_v41, %v852_v12  ;;  %v758_v56 = vadd.f32 %v757_v53, %v303_v10 }
  0xe2   :  { %v2380_v44 = vpop.f32.mrf.mxu0  ;;  %v2436_v60 = vpop.f32.mrf.mxu1 }
  0xe3   :  { %3762 = vst [vmem:[#allocation14_spill] sm:$0xff] %v3219_v57  ;;  %v854_v0 = vmax.f32 %v758_v56, 0.0 }
  0xe4   :  { %v3221_v5 = vpop.f32.mrf.mxu0  ;;  %v760_v61 = vpop.f32.mrf.mxu1 }
  0xe5   :  { %v761_v55 = vadd.f32 %v760_v61, %v308_v7 }
  0xe6   :  { %v2381_v13 = vpop.f32.mrf.mxu0  ;;  %v2437_v14 = vpop.f32.mrf.mxu1 }
  0xe7   :  { %v855_v11 = vmax.f32 %v761_v55, 0.0 }
  0xe8   :  { %v653_v58 = vpop.f32.mrf.mxu0  ;;  %v3223_v3 = vpop.f32.mrf.mxu1 }
  0xe9   :  { %v3225_v33 = vpack.c.bf16 %v855_v11, %v854_v0 }
  0xea   :  { %v2384_v36 = vpop.f32.mrf.mxu0  ;;  %v2440_v40 = vpop.f32.mrf.mxu1 }
  0xec   :  { %v656_v12 = vpop.f32.mrf.mxu0  ;;  %v3227_v41 = vpop.f32.mrf.mxu1 }
  0xee   :  { %v2385_v10 = vpop.f32.mrf.mxu0  ;;  %v2441_v53 = vpop.f32.mrf.mxu1 }
  0xf0   :  { %v661_v44 = vpop.f32.mrf.mxu0  ;;  %v3229_v60 = vpop.f32.mrf.mxu1 }
  0xf1   :  { %v662_v23 = vadd.f32 %v661_v44, %v3068_v39 }
  0xf2   :  { %v2388_v56 = vpop.f32.mrf.mxu0  ;;  %v2444_v7 = vpop.f32.mrf.mxu1 }
  0xf4   :  { %v664_v61 = vpop.f32.mrf.mxu0  ;;  %v3231_v13 = vpop.f32.mrf.mxu1 }
  0xf6   :  { %v2389_v55 = vpop.f32.mrf.mxu0  ;;  %v2445_v14 = vpop.f32.mrf.mxu1 }
  0xf8   :  { %v669_v4 = vpop.f32.mrf.mxu0  ;;  %v3233_v0 = vpop.f32.mrf.mxu1 }
  0xf9   :  { %v670_v27 = vadd.f32 %v669_v4, %v3048_v31  ;;  %v657_v4 = vadd.f32 %v656_v12, %v3076_v42  ;;  %v646_v12 = vadd.f32 %v3217_v52, %v3088_v47  ;;  %v638_v47 = vadd.f32 %v3209_v1, %v3098_v51 }
  0xfa   :  { %v2392_v11 = vpop.f32.mrf.mxu0  ;;  %v2448_v36 = vpop.f32.mrf.mxu1 }
  0xfc   :  { %v672_v40 = vpop.f32.mrf.mxu0  ;;  %v3235_v2 = vpop.f32.mrf.mxu1 }
  0xfd   :  { %v673_v14 = vadd.f32 %v672_v40, %v3058_v35  ;;  %v832_v35 = vmax.f32 %v670_v27, 0.0  ;;  %v3763_v40 = vmov 0   ;;  %v829_v27 = vmax.f32 %v657_v4, 0.0 }
  0xfe   :  { %v2393_v10 = vpop.f32.mrf.mxu0  ;;  %v2449_v53 = vpop.f32.mrf.mxu1 }
 0x100   :  { %v677_v37 = vpop.f32.mrf.mxu0  ;;  %v3237_v49 = vpop.f32.mrf.mxu1 }
 0x101   :  { %v678_v48 = vadd.f32 %v677_v37, %v3046_v30 }
 0x102   :  { %v2396_v56 = vpop.f32.mrf.mxu0  ;;  %v2452_v7 = vpop.f32.mrf.mxu1 }
 0x103   :  { %v834_v57 = vmax.f32 %v678_v48, 0.0  ;;  %v665_v56 = vadd.f32 %v664_v61, %v3066_v38  ;;  %v833_v7 = vmax.f32 %v673_v14, 0.0  ;;  %v654_v38 = vadd.f32 %v653_v58, %v3078_v43 }
 0x104   :  { %v680_v45 = vpop.f32.mrf.mxu0  ;;  %v792_v55 = vpop.f32.mrf.mxu1 }
 0x105   :  { %v681_v28 = vadd.f32 %v680_v45, %v3056_v34  ;;  %v831_v31 = vmax.f32 %v665_v56, 0.0 }
 0x106   :  { %v2397_v11 = vpop.f32.mrf.mxu0  ;;  %v2453_v36 = vpop.f32.mrf.mxu1 }
 0x107   :  { %v835_v10 = vmax.f32 %v681_v28, 0.0  ;;  %v952_v28 = vpack.c.bf16 %v833_v7, %v832_v35  ;;  %v828_v36 = vmax.f32 %v654_v38, 0.0 }
 0x108   :  { %v3243_v53 = vpop.f32.mrf.mxu0  ;;  %v797_v24 = vpop.f32.mrf.mxu1 }
 0x109   :  { %v953_v19 = vpack.c.bf16 %v835_v10, %v834_v57  ;;  %v830_v57 = vmax.f32 %v662_v23, 0.0  ;;  %v641_v23 = vadd.f32 %v3215_v54, %v3096_v50 }
 0x10a   :  { %v2400_v30 = vpop.f32.mrf.mxu0  ;;  %v2456_v37 = vpop.f32.mrf.mxu1 }
 0x10b   :  { %1618 = vmatpush1.bf16.msra.mxu1 %v953_v19  ;;  %v649_v19 = vadd.f32 %v3221_v5, %v3086_v46  ;;  %v951_v44 = vpack.c.bf16 %v831_v31, %v830_v57  ;;  %v950_v5 = vpack.c.bf16 %v829_v27, %v828_v36  ;;  %v826_v30 = vmax.f32 %v646_v12, 0.0 }
 0x10c   :  { %v3247_v34 = vpop.f32.mrf.mxu0  ;;  %v800_v45 = vpop.f32.mrf.mxu1  ;;  %1619 = vmatprep.subr.bf16.mxu1 %v3763_v40  ;;  %v798_v37 = vadd.f32 %v797_v24, %v3142_v9  ;;  %v825_v35 = vmax.f32 %v641_v23, 0.0  ;;  %v790_v9 = vadd.f32 %v3237_v49, %v3158_v17  ;;  %v782_v17 = vadd.f32 %v3233_v0, %v3169_v22 }
 0x10d   :  { %v827_v46 = vmax.f32 %v649_v19, 0.0  ;;  %v801_v56 = vadd.f32 %v800_v45, %v3140_v8  ;;  %v774_v12 = vadd.f32 %v3229_v60, %v3177_v26  ;;  %v769_v0 = vadd.f32 %v3227_v41, %v3183_v29 }
 0x10e   :  { %v2401_v48 = vpop.f32.mrf.mxu0  ;;  %v2457_v11 = vpop.f32.mrf.mxu1  ;;  %v864_v24 = vmax.f32 %v798_v37, 0.0  ;;  %v862_v49 = vmax.f32 %v790_v9, 0.0  ;;  %v860_v36 = vmax.f32 %v782_v17, 0.0  ;;  %v766_v23 = vadd.f32 %v3223_v3, %v3185_v32  ;;  %v3767_v9 = vld [vmem:[#allocation14_spill] sm:$0xff] }
 0x10f   :  { %1620 = vmatpush1.bf16.msra.mxu1 %v952_v28  ;;  %v949_v8 = vpack.c.bf16 %v827_v46, %v826_v30  ;;  %v865_v45 = vmax.f32 %v801_v56, 0.0  ;;  %v824_v48 = vmax.f32 %v638_v47, 0.0  ;;  %v3304_v46 = vpop.permute.xlu1 %217 }
 0x110   :  { %v3252_v61 = vpop.f32.mrf.mxu0  ;;  %v805_v39 = vpop.f32.mrf.mxu1  ;;  %1621 = vmatprep.subr.bf16.mxu1 %v3763_v40  ;;  %v856_v41 = vmax.f32 %v766_v23, 0.0 }
 0x111   :  { %v806_v43 = vadd.f32 %v805_v39, %v3124_v63  ;;  %v948_v57 = vpack.c.bf16 %v825_v35, %v824_v48  ;;  %v968_v39 = vpack.c.bf16 %v865_v45, %v864_v24  ;;  %v3765_v35 = vld [vmem:[#allocation5_spill] sm:$0xff] }
 0x112   :  { %v2404_v14 = vpop.f32.mrf.mxu0  ;;  %v2460_v42 = vpop.f32.mrf.mxu1 }
 0x113   :  { %1622 = vmatpush1.bf16.msra.mxu1 %v951_v44  ;;  %v866_v50 = vmax.f32 %v806_v43, 0.0  ;;  %v777_v14 = vadd.f32 %v3231_v13, %v3175_v25  ;;  %v378_v56 = vpop.permute.xlu1 %377 }
 0x114   :  { %v3262_v58 = vpop.f32.mrf.mxu0  ;;  %v808_v10 = vpop.f32.mrf.mxu1  ;;  %1623 = vmatprep.subr.bf16.mxu1 %v3763_v40 }
 0x115   :  { %v809_v7 = vadd.f32 %v808_v10, %v3122_v62  ;;  %v793_v62 = vadd.f32 %v792_v55, %v3156_v16  ;;  %v785_v16 = vadd.f32 %v3235_v2, %v3167_v21  ;;  %v859_v43 = vmax.f32 %v777_v14, 0.0 }
 0x116   :  { %v2405_v52 = vpop.f32.mrf.mxu0  ;;  %v2461_v63 = vpop.f32.mrf.mxu1  ;;  %v858_v10 = vmax.f32 %v774_v12, 0.0 }
 0x117   :  { %v867_v54 = vmax.f32 %v809_v7, 0.0  ;;  %1624 = vmatpush1.bf16.msra.mxu1 %v950_v5  ;;  %v863_v55 = vmax.f32 %v793_v62, 0.0  ;;  %v861_v2 = vmax.f32 %v785_v16, 0.0  ;;  %v3307_v5 = vpop.permute.xlu0 %212  ;;  %v3769_v16 = vld [vmem:[#allocation9_spill] sm:$0xff] }
 0x118   :  { %v3270_v4 = vpop.f32.mrf.mxu0  ;;  %v3272_v31 = vpop.f32.mrf.mxu1  ;;  %1625 = vmatprep.subr.bf16.mxu1 %v3763_v40  ;;  %v965_v60 = vpack.c.bf16 %v859_v43, %v858_v10  ;;  %v686_v10 = vadd.f32 %v3243_v53, %v3307_v5  ;;  %v2530_v5 = vld [vmem:[%s3744_s3 + $0x68] ss:$16 sps:$4 sm:$0xff]  }
 0x119   :  { %v969_v51 = vpack.c.bf16 %v867_v54, %v866_v50  ;;  %v967_v21 = vpack.c.bf16 %v863_v55, %v862_v49  ;;  %v966_v25 = vpack.c.bf16 %v861_v2, %v860_v36  ;;  %v3764_v50 = vld [vmem:[#allocation6_spill] sm:$0xff]  ;;  %v3771_v2 = vld [vmem:[#allocation11_spill] sm:$0xff] }
 0x11a   :  { %v2408_v1 = vpop.f32.mrf.mxu0  ;;  %v2464_v28 = vpop.f32.mrf.mxu1 }
 0x11b   :  { %1626 = vmatpush1.bf16.msra.mxu1 %v949_v8  ;;  %1803 = vmatpush1.bf16.msra.mxu0 %v969_v51  ;;  %v373_v47 = vpop.permute.xlu0 %372  ;;  %v3766_v51 = vld [vmem:[#allocation7_spill] sm:$0xff] }
 0x11c   :  { %v3278_v11 = vpop.f32.mrf.mxu0  ;;  %v816_v38 = vpop.f32.mrf.mxu1  ;;  %1627 = vmatprep.subr.bf16.mxu1 %v3763_v40  ;;  %1804 = vmatprep.subr.bf16.mxu0 %v3763_v40  ;;  %v814_v63 = vadd.f32 %v3272_v31, %v373_v47  ;;  %v2542_v47 = vld [vmem:[%s3744_s3 + $0xa8] ss:$16 sps:$4 sm:$0xff]  }
 0x11e   :  { %v2409_v19 = vpop.f32.mrf.mxu0  ;;  %v2465_v27 = vpop.f32.mrf.mxu1  ;;  %v868_v45 = vmax.f32 %v814_v63, 0.0  ;;  %v2533_v63 = vld [vmem:[%s3744_s3 + $0x60] ss:$16 sps:$4 sm:$0xff]  }
 0x11f   :  { %1628 = vmatpush1.bf16.msra.mxu1 %v948_v57  ;;  %1805 = vmatpush1.bf16.msra.mxu0 %v968_v39  ;;  %v2510_v57 = vld [vmem:[%s3744_s3 + $0x8] ss:$16 sps:$4 sm:$0xff]   ;;  %v2516_v19 = vld [vmem:[%s3744_s3 + $0x2c] ss:$16 sps:$4 sm:$0xff]   ;;  %v3770_v27 = vld [vmem:[#allocation10_spill] sm:$0xff] }
 0x120   :  { %v3286_v44 = vpop.f32.mrf.mxu0  ;;  %1629 = vmatprep.subr.bf16.mxu1 %v3763_v40  ;;  %1806 = vmatprep.subr.bf16.mxu0 %v3763_v40  ;;  %v705_v17 = vadd.f32 %v3278_v11, %v3770_v27  ;;  %v2518_v11 = vld [vmem:[%s3744_s3 + $0x28] ss:$16 sps:$4 sm:$0xff]   ;;  %v2573_v27 = vld [vmem:[%s3744_s3 + $0x144] ss:$16 sps:$4 sm:$0xff]  }
 0x121   :  { %v710_v55 = vadd.f32 %v3286_v44, %v3769_v16  ;;  %v3772_v44 = vld [vmem:[#allocation13_spill] sm:$0xff]  ;;  %v2567_v16 = vld [vmem:[%s3744_s3 + $0x124] ss:$16 sps:$4 sm:$0xff]  }
 0x122   :  { %v2412_v42 = vpop.f32.mrf.mxu0  ;;  %v697_v12 = vadd.f32 %v3262_v58, %v3772_v44  ;;  %v841_v36 = vmax.f32 %v705_v17, 0.0  ;;  %v689_v58 = vadd.f32 %v3247_v34, %v3304_v46  ;;  %v2528_v34 = vld [vmem:[%s3744_s3 + $0x6c] ss:$16 sps:$4 sm:$0xff]   ;;  %v2513_v46 = vld [vmem:[%s3744_s3] ss:$16 sps:$4 sm:$0xff]  }
 0x123   :  { %1630 = vmatpush1.bf16.msra.mxu1 %v3211_v6  ;;  %1807 = vmatpush1.bf16.msra.mxu0 %v967_v21  ;;  %v857_v6 = vmax.f32 %v769_v0, 0.0  ;;  %v702_v21 = vadd.f32 %v3270_v4, %v3771_v2  ;;  %v842_v42 = vmax.f32 %v710_v55, 0.0  ;;  %v3773_v0 = vld [vmem:[#allocation12_spill] sm:$0xff]  ;;  %v2522_v4 = vld [vmem:[%s3744_s3 + $0x4c] ss:$16 sps:$4 sm:$0xff]  }
 0x124   :  { %v712_v22 = vpop.f32.mrf.mxu0  ;;  %1631 = vmatprep.subr.bf16.mxu1 %v3763_v40  ;;  %1808 = vmatprep.subr.bf16.mxu0 %v3763_v40  ;;  %v694_v43 = vadd.f32 %v3252_v61, %v3773_v0  ;;  %v837_v61 = vmax.f32 %v689_v58, 0.0  ;;  %v2578_v55 = vld [vmem:[%s3744_s3 + $0x168] ss:$16 sps:$4 sm:$0xff]   ;;  %v2579_v2 = vld [vmem:[%s3744_s3 + $0x164] ss:$16 sps:$4 sm:$0xff]   ;;  %v3535_v58 = vpop.permute.xlu0 %1161 }
 0x125   :  { %v2584_v17 = vld [vmem:[%s3744_s3 + $0x188] ss:$16 sps:$4 sm:$0xff]   ;;  %v2581_v44 = vld [vmem:[%s3744_s3 + $0x160] ss:$16 sps:$4 sm:$0xff]   ;;  %v2591_v0 = vld [vmem:[%s3744_s3 + $0x1a4] ss:$16 sps:$4 sm:$0xff]  }
 0x126   :  { %v2413_v13 = vpop.f32.mrf.mxu0 }
 0x127   :  { %1632 = vmatpush1.bf16.msra.mxu1 %v3198_v15  ;;  %1809 = vmatpush1.bf16.msra.mxu0 %v966_v25  ;;  %v964_v15 = vpack.c.bf16 %v857_v6, %v856_v41  ;;  %v840_v25 = vmax.f32 %v702_v21, 0.0  ;;  %v839_v13 = vmax.f32 %v697_v12, 0.0  ;;  %v2519_v41 = vld [vmem:[%s3744_s3 + $0x24] ss:$16 sps:$4 sm:$0xff]   ;;  %v2590_v21 = vld [vmem:[%s3744_s3 + $0x1a8] ss:$16 sps:$4 sm:$0xff]  }
 0x128   :  { %v717_v26 = vpop.f32.mrf.mxu0  ;;  %1633 = vmatprep.subr.bf16.mxu1 %v3763_v40  ;;  %1810 = vmatprep.subr.bf16.mxu0 %v3763_v40  ;;  %v2585_v12 = vld [vmem:[%s3744_s3 + $0x184] ss:$16 sps:$4 sm:$0xff]  }
 0x129   :  { %v718_v1 = vadd.f32 %v717_v26, %v3766_v51  ;;  %v956_v23 = vpack.c.bf16 %v841_v36, %v840_v25  ;;  %v838_v26 = vmax.f32 %v694_v43, 0.0  ;;  %v2560_v51 = vld [vmem:[%s3744_s3 + $0x108] ss:$16 sps:$4 sm:$0xff]   ;;  %v2609_v25 = vld [vmem:[%s3744_s3 + $0x20c] ss:$16 sps:$4 sm:$0xff]  }
 0x12a   :  { %v2416_v29 = vpop.f32.mrf.mxu0  ;;  %v2596_v36 = vld [vmem:[%s3744_s3 + $0x1c8] ss:$16 sps:$4 sm:$0xff]  }
 0x12b   :  { %1634 = vmatpush2.bf16.msra.mxu1 %v3213_v59  ;;  %1811 = vmatpush1.bf16.msra.mxu0 %v965_v60  ;;  %v817_v59 = vadd.f32 %v816_v38, %v378_v56  ;;  %v844_v39 = vmax.f32 %v718_v1, 0.0  ;;  %v955_v6 = vpack.c.bf16 %v839_v13, %v838_v26  ;;  %v2524_v60 = vld [vmem:[%s3744_s3 + $0x48] ss:$16 sps:$4 sm:$0xff]   ;;  %v836_v29 = vmax.f32 %v686_v10, 0.0  ;;  %v2540_v56 = vld [vmem:[%s3744_s3 + $0xac] ss:$16 sps:$4 sm:$0xff]   ;;  %v3544_v10 = vpop.permute.xlu1 %1166 }
 0x12c   :  { %v720_v32 = vpop.f32.mrf.mxu0  ;;  %1635 = vmatprep.subr.bf16.mxu1 %v3763_v40  ;;  %1812 = vmatprep.subr.bf16.mxu0 %v3763_v40  ;;  %v2564_v1 = vld [vmem:[%s3744_s3 + $0x12c] ss:$16 sps:$4 sm:$0xff]   ;;  %v2602_v43 = vld [vmem:[%s3744_s3 + $0x1e8] ss:$16 sps:$4 sm:$0xff]   ;;  %v2597_v13 = vld [vmem:[%s3744_s3 + $0x1c4] ss:$16 sps:$4 sm:$0xff]  }
 0x12d   :  { %v721_v54 = vadd.f32 %v720_v32, %v3764_v50  ;;  %v954_v53 = vpack.c.bf16 %v837_v61, %v836_v29  ;;  %v2521_v32 = vld [vmem:[%s3744_s3 + $0x20] ss:$16 sps:$4 sm:$0xff]   ;;  %v2615_v26 = vld [vmem:[%s3744_s3 + $0x22c] ss:$16 sps:$4 sm:$0xff]   ;;  %v3549_v61 = vpop.permute.xlu0 %1081 }
 0x12e   :  { %v2417_v3 = vpop.f32.mrf.mxu0  ;;  %v2539_v50 = vld [vmem:[%s3744_s3 + $0x80] ss:$16 sps:$4 sm:$0xff]  }
 0x12f   :  { %1636 = vmatpush2.bf16.msra.mxu1 %v3200_v18  ;;  %1813 = vmatpush1.bf16.msra.mxu0 %v964_v15  ;;  %v869_v18 = vmax.f32 %v817_v59, 0.0  ;;  %v845_v24 = vmax.f32 %v721_v54, 0.0  ;;  %v2525_v15 = vld [vmem:[%s3744_s3 + $0x44] ss:$16 sps:$4 sm:$0xff]   ;;  %v2536_v3 = vld [vmem:[%s3744_s3 + $0x88] ss:$16 sps:$4 sm:$0xff]   ;;  %v3558_v29 = vpop.permute.xlu1 %1086 }
 0x130   :  { %v725_v7 = vpop.f32.mrf.mxu0  ;;  %1814 = vmatprep.subr.bf16.mxu0 %v3763_v40  ;;  %1637 = vmatprep.subr.bf16.mxu1 %v3763_v40  ;;  %v2531_v59 = vld [vmem:[%s3744_s3 + $0x64] ss:$16 sps:$4 sm:$0xff]  }
 0x131   :  { %v726_v30 = vadd.f32 %v725_v7, %v3165_v20  ;;  %v970_v20 = vpack.c.bf16 %v869_v18, %v868_v45  ;;  %v958_v14 = vpack.c.bf16 %v845_v24, %v844_v39  ;;  %v2527_v7 = vld [vmem:[%s3744_s3 + $0x40] ss:$16 sps:$4 sm:$0xff]   ;;  %v2552_v18 = vld [vmem:[%s3744_s3 + $0xec] ss:$16 sps:$4 sm:$0xff]   ;;  %v2543_v54 = vld [vmem:[%s3744_s3 + $0xa4] ss:$16 sps:$4 sm:$0xff]  }
 0x132   :  { %v2420_v52 = vpop.f32.mrf.mxu0  ;;  %v2549_v45 = vld [vmem:[%s3744_s3 + $0xc4] ss:$16 sps:$4 sm:$0xff]   ;;  %v2572_v24 = vld [vmem:[%s3744_s3 + $0x148] ss:$16 sps:$4 sm:$0xff]   ;;  %v2582_v39 = vld [vmem:[%s3744_s3 + $0x18c] ss:$16 sps:$4 sm:$0xff]  }
 0x133   :  { %1815 = vmatpush1.bf16.msra.mxu0 %v3225_v33  ;;  %v846_v28 = vmax.f32 %v726_v30, 0.0  ;;  %v3768_v33 = vld [vmem:[#allocation8_spill] sm:$0xff]  ;;  %v2546_v52 = vld [vmem:[%s3744_s3 + $0xcc] ss:$16 sps:$4 sm:$0xff]  }
 0x134   :  { %v728_v37 = vpop.f32.mrf.mxu0  ;;  %1816 = vmatprep.subr.bf16.mxu0 %v3763_v40  ;;  %v713_v31 = vadd.f32 %v712_v22, %v3768_v33  ;;  %v2537_v30 = vld [vmem:[%s3744_s3 + $0x84] ss:$16 sps:$4 sm:$0xff]   ;;  %v2557_v33 = vld [vmem:[%s3744_s3 + $0xe0] ss:$16 sps:$4 sm:$0xff]  }
 0x135   :  { %v729_v8 = vadd.f32 %v728_v37, %v3765_v35  ;;  %v2548_v37 = vld [vmem:[%s3744_s3 + $0xc8] ss:$16 sps:$4 sm:$0xff]  }
 0x136   :  { %v2421_v62 = vpop.f32.mrf.mxu0  ;;  %v843_v49 = vmax.f32 %v713_v31, 0.0  ;;  %v2554_v35 = vld [vmem:[%s3744_s3 + $0xe8] ss:$16 sps:$4 sm:$0xff]   ;;  %v2561_v31 = vld [vmem:[%s3744_s3 + $0x104] ss:$16 sps:$4 sm:$0xff]  }
 0x137   :  { %v847_v48 = vmax.f32 %v729_v8, 0.0  ;;  %1817 = vmatpush1.bf16.msra.mxu0 %v3767_v9  ;;  %v2558_v8 = vld [vmem:[%s3744_s3 + $0x10c] ss:$16 sps:$4 sm:$0xff]   ;;  %v2545_v62 = vld [vmem:[%s3744_s3 + $0xa0] ss:$16 sps:$4 sm:$0xff]  }
 0x138   :  { %1832 = vmatprep.subr.bf16.mxu0 %v3763_v40  ;;  %v957_v22 = vpack.c.bf16 %v843_v49, %v842_v42  ;;  %v2566_v9 = vld [vmem:[%s3744_s3 + $0x128] ss:$16 sps:$4 sm:$0xff]   ;;  %v2588_v49 = vld [vmem:[%s3744_s3 + $0x1ac] ss:$16 sps:$4 sm:$0xff]  }
 0x139   :  { %v959_v38 = vpack.c.bf16 %v847_v48, %v846_v28  ;;  %v2551_v28 = vld [vmem:[%s3744_s3 + $0xc0] ss:$16 sps:$4 sm:$0xff]   ;;  %v2555_v48 = vld [vmem:[%s3744_s3 + $0xe4] ss:$16 sps:$4 sm:$0xff]   ;;  %v2594_v42 = vld [vmem:[%s3744_s3 + $0x1cc] ss:$16 sps:$4 sm:$0xff]  }
 0x13b   :  { %1638 = vmatpush2.bf16.msra.mxu1 %v959_v38  ;;  %1833 = vmatpush2.bf16.msra.mxu0 %v970_v20  ;;  %v2570_v20 = vld [vmem:[%s3744_s3 + $0x14c] ss:$16 sps:$4 sm:$0xff]  }
 0x13c   :  { %1639 = vmatprep.subr.bf16.mxu1 %v3763_v40  ;;  %v2576_v38 = vld [vmem:[%s3744_s3 + $0x16c] ss:$16 sps:$4 sm:$0xff]  }
 0x13e   :  { %1835 = vmatmul.mubr.bf16.vlgmr.msra.gmra.mxu0 %v2510_v57  ;;  %v2563_v57 = vld [vmem:[%s3744_s3 + $0x100] ss:$16 sps:$4 sm:$0xff]  }
 0x13f   :  { %1640 = vmatpush2.bf16.msra.mxu1 %v958_v14  ;;  %2290 = vmatprep.mubr.msk.bf16.mxu0 %vm511_vm1, %v2516_v19  ;;  %v2569_v19 = vld [vmem:[%s3744_s3 + $0x120] ss:$16 sps:$4 sm:$0xff]  }
 0x140   :  { %1641 = vmatprep.subr.bf16.mxu1 %v3763_v40  ;;  %v2575_v14 = vld [vmem:[%s3744_s3 + $0x140] ss:$16 sps:$4 sm:$0xff]  }
 0x143   :  { %1642 = vmatpush2.bf16.msra.mxu1 %v957_v22  ;;  %v2600_v22 = vld [vmem:[%s3744_s3 + $0x1ec] ss:$16 sps:$4 sm:$0xff]  }
 0x144   :  { %1643 = vmatprep.subr.bf16.mxu1 %v3763_v40 }
 0x146   :  { %1843 = vmatmul.mubr.bf16.gmra.mxu0 %v2518_v11  ;;  %v2587_v11 = vld [vmem:[%s3744_s3 + $0x180] ss:$16 sps:$4 sm:$0xff]  }
 0x147   :  { %1644 = vmatpush2.bf16.msra.mxu1 %v956_v23  ;;  %2291 = vmatprep.mubr.msk.bf16.mxu0 %vm511_vm1, %v2522_v4  ;;  %v2593_v4 = vld [vmem:[%s3744_s3 + $0x1a0] ss:$16 sps:$4 sm:$0xff]   ;;  %v2611_v23 = vld [vmem:[%s3744_s3 + $0x208] ss:$16 sps:$4 sm:$0xff]  }
 0x148   :  { %1645 = vmatprep.subr.bf16.mxu1 %v3763_v40 }
 0x14b   :  { %1646 = vmatpush2.bf16.msra.mxu1 %v955_v6  ;;  %v2599_v6 = vld [vmem:[%s3744_s3 + $0x1c0] ss:$16 sps:$4 sm:$0xff]  }
 0x14c   :  { %1647 = vmatprep.subr.bf16.mxu1 %v3763_v40  ;;  %v2534_v40 = vld [vmem:[%s3744_s3 + $0x8c] ss:$16 sps:$4 sm:$0xff]  }
 0x14e   :  { %1851 = vmatmul.mubr.bf16.gmra.mxu0 %v2524_v60  ;;  %v2603_v60 = vld [vmem:[%s3744_s3 + $0x1e4] ss:$16 sps:$4 sm:$0xff]  }
 0x14f   :  { %1648 = vmatpush2.bf16.msra.mxu1 %v954_v53  ;;  %2292 = vmatprep.mubr.msk.bf16.mxu0 %vm511_vm1, %v2528_v34  ;;  %v2617_v34 = vld [vmem:[%s3744_s3 + $0x228] ss:$16 sps:$4 sm:$0xff]   ;;  %v3563_v53 = vpop.permute.xlu0 %1151 }
 0x152   :  { %1650 = vmatmul.mubr.bf16.vlgmr.msra.gmra.mxu1 %v2513_v46  ;;  %v2621_v46 = vld [vmem:[%s3744_s3 + $0x24c] ss:$16 sps:$4 sm:$0xff]  }
 0x153   :  { %1657 = vmatprep.mubr.bf16.mxu1 %v2519_v41  ;;  %v2605_v41 = vld [vmem:[%s3744_s3 + $0x1e0] ss:$16 sps:$4 sm:$0xff]  }
 0x156   :  { %1859 = vmatmul.mubr.bf16.gmra.mxu0 %v2530_v5  ;;  %v3571_v5 = vpop.permute.xlu1 %1156 }
 0x157   :  { %2293 = vmatprep.mubr.msk.bf16.mxu0 %vm511_vm1, %v2534_v40  ;;  %v2606_v40 = vld [vmem:[%s3744_s3 + $0x204] ss:$16 sps:$4 sm:$0xff]  }
 0x15a   :  { %1658 = vmatmul.mubr.bf16.gmra.mxu1 %v2521_v32  ;;  %v3577_v32 = vpop.permute.xlu0 %1071 }
 0x15b   :  { %1665 = vmatprep.mubr.bf16.mxu1 %v2525_v15  ;;  %v2623_v15 = vld [vmem:[%s3744_s3 + $0x248] ss:$16 sps:$4 sm:$0xff]  }
 0x15e   :  { %1867 = vmatmul.mubr.bf16.gmra.mxu0 %v2536_v3  ;;  %v3582_v3 = vpop.permute.xlu1 %1076 }
 0x15f   :  { %2294 = vmatprep.mubr.msk.bf16.mxu0 %vm511_vm1, %v2540_v56  ;;  %v2608_v56 = vld [vmem:[%s3744_s3 + $0x200] ss:$16 sps:$4 sm:$0xff]  }
 0x162   :  { %1666 = vmatmul.mubr.bf16.gmra.mxu1 %v2527_v7  ;;  %v3587_v7 = vpop.permute.xlu0 %1141 }
 0x163   :  { %1673 = vmatprep.mubr.bf16.mxu1 %v2531_v59  ;;  %v2614_v59 = vld [vmem:[%s3744_s3 + $0x224] ss:$16 sps:$4 sm:$0xff]  }
 0x166   :  { %1875 = vmatmul.mubr.bf16.gmra.mxu0 %v2542_v47  ;;  %v3592_v47 = vpop.permute.xlu1 %1146 }
 0x167   :  { %2295 = vmatprep.mubr.msk.bf16.mxu0 %vm511_vm1, %v2546_v52  ;;  %v3594_v52 = vpop.permute.xlu0 %1061 }
 0x16a   :  { %1674 = vmatmul.mubr.bf16.gmra.mxu1 %v2533_v63  ;;  %v2612_v63 = vld [vmem:[%s3744_s3 + $0x220] ss:$16 sps:$4 sm:$0xff]  }
 0x16b   :  { %1681 = vmatprep.mubr.bf16.mxu1 %v2537_v30  ;;  %v2620_v30 = vld [vmem:[%s3744_s3 + $0x244] ss:$16 sps:$4 sm:$0xff]  }
 0x16e   :  { %1883 = vmatmul.mubr.bf16.gmra.mxu0 %v2548_v37  ;;  %v3602_v37 = vpop.permute.xlu1 %1066 }
 0x16f   :  { %2296 = vmatprep.mubr.msk.bf16.mxu0 %vm511_vm1, %v2552_v18  ;;  %v3604_v18 = vpop.permute.xlu0 %1131 }
 0x172   :  { %1682 = vmatmul.mubr.bf16.gmra.mxu1 %v2539_v50  ;;  %v2618_v50 = vld [vmem:[%s3744_s3 + $0x240] ss:$16 sps:$4 sm:$0xff]  }
 0x173   :  { %1689 = vmatprep.mubr.bf16.mxu1 %v2543_v54  ;;  %v3609_v54 = vpop.permute.xlu1 %1136 }
 0x176   :  { %1891 = vmatmul.mubr.bf16.gmra.mxu0 %v2554_v35  ;;  %v3611_v35 = vpop.permute.xlu0 %1051 }
 0x177   :  { %2297 = vmatprep.mubr.msk.bf16.mxu0 %vm511_vm1, %v2558_v8  ;;  %v3613_v8 = vpop.permute.xlu1 %1056 }
 0x17a   :  { %1690 = vmatmul.mubr.bf16.gmra.mxu1 %v2545_v62  ;;  %v3615_v62 = vpop.permute.xlu0 %1121 }
 0x17b   :  { %1697 = vmatprep.mubr.bf16.mxu1 %v2549_v45  ;;  %v3617_v45 = vpop.permute.xlu1 %1126 }
 0x17e   :  { %1899 = vmatmul.mubr.bf16.gmra.mxu0 %v2560_v51  ;;  %v3619_v51 = vpop.permute.xlu0 %1041 }
 0x17f   :  { %2298 = vmatprep.mubr.msk.bf16.mxu0 %vm511_vm1, %v2564_v1  ;;  %v3621_v1 = vpop.permute.xlu1 %1046 }
 0x182   :  { %1698 = vmatmul.mubr.bf16.gmra.mxu1 %v2551_v28  ;;  %v3623_v28 = vpop.permute.xlu0 %1111 }
 0x183   :  { %1705 = vmatprep.mubr.bf16.mxu1 %v2555_v48  ;;  %v3625_v48 = vpop.permute.xlu1 %1116 }
 0x186   :  { %1907 = vmatmul.mubr.bf16.gmra.mxu0 %v2566_v9  ;;  %v1032_v9 = vpop.permute.xlu0 %1031 }
 0x187   :  { %2299 = vmatprep.mubr.msk.bf16.mxu0 %vm511_vm1, %v2570_v20  ;;  %v1037_v20 = vpop.permute.xlu1 %1036 }
 0x18a   :  { %1706 = vmatmul.mubr.bf16.gmra.mxu1 %v2557_v33 }
 0x18b   :  { %1713 = vmatprep.mubr.bf16.mxu1 %v2561_v31  ;;  %v3627_v31 = vpop.permute.xlu0 %1101 }
 0x18e   :  { %1915 = vmatmul.mubr.bf16.gmra.mxu0 %v2572_v24 }
 0x18f   :  { %2300 = vmatprep.mubr.msk.bf16.mxu0 %vm511_vm1, %v2576_v38 }
 0x192   :  { %1714 = vmatmul.mubr.bf16.gmra.mxu1 %v2563_v57  ;;  %v3629_v57 = vpop.permute.xlu1 %1106 }
 0x193   :  { %1721 = vmatprep.mubr.bf16.mxu1 %v2567_v16 }
 0x196   :  { %1923 = vmatmul.mubr.bf16.gmra.mxu0 %v2578_v55  ;;  %v1022_v55 = vpop.permute.xlu0 %1021 }
 0x197   :  { %2301 = vmatprep.mubr.msk.bf16.mxu0 %vm511_vm1, %v2582_v39 }
 0x19a   :  { %1722 = vmatmul.mubr.bf16.gmra.mxu1 %v2569_v19 }
 0x19b   :  { %1729 = vmatprep.mubr.bf16.mxu1 %v2573_v27  ;;  %v1027_v27 = vpop.permute.xlu1 %1026 }
 0x19e   :  { %1931 = vmatmul.mubr.bf16.gmra.mxu0 %v2584_v17 }
 0x19f   :  { %2302 = vmatprep.mubr.msk.bf16.mxu0 %vm511_vm1, %v2588_v49  ;;  %v3631_v49 = vpop.permute.xlu0 %1091 }
 0x1a2   :  { %1730 = vmatmul.mubr.bf16.gmra.mxu1 %v2575_v14 }
 0x1a3   :  { %1737 = vmatprep.mubr.bf16.mxu1 %v2579_v2 }
 0x1a6   :  { %1939 = vmatmul.mubr.bf16.gmra.mxu0 %v2590_v21  ;;  %v3633_v21 = vpop.permute.xlu1 %1096 }
 0x1a7   :  { %2303 = vmatprep.mubr.msk.bf16.mxu0 %vm511_vm1, %v2594_v42 }
 0x1aa   :  { %1738 = vmatmul.mubr.bf16.gmra.mxu1 %v2581_v44  ;;  %v1012_v44 = vpop.permute.xlu0 %1011 }
 0x1ab   :  { %1745 = vmatprep.mubr.bf16.mxu1 %v2585_v12 }
 0x1ae   :  { %1947 = vmatmul.mubr.bf16.gmra.mxu0 %v2596_v36 }
 0x1af   :  { %2304 = vmatprep.mubr.msk.bf16.mxu0 %vm511_vm1, %v2600_v22 }
 0x1b2   :  { %1746 = vmatmul.mubr.bf16.gmra.mxu1 %v2587_v11 }
 0x1b3   :  { %1753 = vmatprep.mubr.bf16.mxu1 %v2591_v0 }
 0x1b6   :  { %1955 = vmatmul.mubr.bf16.gmra.mxu0 %v2602_v43  ;;  %v1017_v43 = vpop.permute.xlu1 %1016 }
 0x1b7   :  { %2305 = vmatprep.mubr.msk.bf16.mxu0 %vm511_vm1, %v2609_v25 }
 0x1ba   :  { %1754 = vmatmul.mubr.bf16.gmra.mxu1 %v2593_v4 }
 0x1bb   :  { %1761 = vmatprep.mubr.bf16.mxu1 %v2597_v13 }
 0x1be   :  { %1963 = vmatmul.mubr.bf16.gmra.mxu0 %v2611_v23 }
 0x1bf   :  { %2306 = vmatprep.mubr.msk.bf16.mxu0 %vm511_vm1, %v2615_v26 }
 0x1c2   :  { %1762 = vmatmul.mubr.bf16.gmra.mxu1 %v2599_v6 }
 0x1c3   :  { %1769 = vmatprep.mubr.bf16.mxu1 %v2603_v60 }
 0x1c6   :  { %1971 = vmatmul.mubr.bf16.gmra.mxu0 %v2617_v34 }
 0x1c7   :  { %2307 = vmatprep.mubr.msk.bf16.mxu0 %vm511_vm1, %v2621_v46 }
 0x1ca   :  { %1770 = vmatmul.mubr.bf16.gmra.mxu1 %v2605_v41 }
 0x1cb   :  { %1777 = vmatprep.mubr.bf16.mxu1 %v2606_v40 }
 0x1ce   :  { %1979 = vmatmul.mubr.bf16.gmra.mxu0 %v2623_v15 }
 0x1d2   :  { %1778 = vmatmul.mubr.bf16.gmra.mxu1 %v2608_v56 }
 0x1d3   :  { %1785 = vmatprep.mubr.bf16.mxu1 %v2614_v59 }
 0x1da   :  { %1786 = vmatmul.mubr.bf16.gmra.mxu1 %v2612_v63 }
 0x1db   :  { %1793 = vmatprep.mubr.bf16.mxu1 %v2620_v30 }
 0x1e2   :  { %1794 = vmatmul.mubr.bf16.gmra.mxu1 %v2618_v50 }
 0x1fe   :  { %v1836_v33 = vpop.f32.mrf.mxu0 }
 0x200   :  { %v1838_v24 = vpop.f32.mrf.mxu0 }
 0x202   :  { %v1839_v38 = vpop.f32.mrf.mxu0 }
 0x204   :  { %v1841_v16 = vpop.f32.mrf.mxu0 }
 0x206   :  { %v1844_v39 = vpop.f32.mrf.mxu0 }
 0x208   :  { %v1846_v19 = vpop.f32.mrf.mxu0 }
 0x20a   :  { %v1847_v17 = vpop.f32.mrf.mxu0 }
 0x20c   :  { %v1849_v14 = vpop.f32.mrf.mxu0 }
 0x20e   :  { %v1852_v2 = vpop.f32.mrf.mxu0 }
 0x210   :  { %v1854_v42 = vpop.f32.mrf.mxu0 }
 0x212   :  { %v1651_v12 = vpop.f32.mrf.mxu1  ;;  %v1855_v36 = vpop.f32.mrf.mxu0 }
 0x213   :  { %v1652_v22 = vadd.f32 %v1651_v12, %v1012_v44 }
 0x214   :  { %v1653_v11 = vpop.f32.mrf.mxu1  ;;  %v1857_v0 = vpop.f32.mrf.mxu0 }
 0x215   :  { %v1837_v25 = vadd.f32 %v1836_v33, %v1652_v22 }
 0x216   :  { %v1654_v4 = vpop.f32.mrf.mxu1  ;;  %v1860_v13 = vpop.f32.mrf.mxu0 }
 0x217   :  { %v1655_v23 = vadd.f32 %v1654_v4, %v1017_v43  ;;  %v1987_v41 = vmax.f32 %v1837_v25, 0.0 }
 0x218   :  { %v1656_v26 = vpop.f32.mrf.mxu1  ;;  %v1862_v6 = vpop.f32.mrf.mxu0 }
 0x219   :  { %v1840_v60 = vadd.f32 %v1839_v38, %v1655_v23 }
 0x21a   :  { %v1659_v34 = vpop.f32.mrf.mxu1  ;;  %v1863_v46 = vpop.f32.mrf.mxu0 }
 0x21b   :  { %v1988_v40 = vmax.f32 %v1840_v60, 0.0  ;;  %v1660_v15 = vadd.f32 %v1659_v34, %v1022_v55 }
 0x21c   :  { %v1661_v56 = vpop.f32.mrf.mxu1  ;;  %v1865_v59 = vpop.f32.mrf.mxu0 }
 0x21d   :  { %v3635_v63 = vpack.c.bf16 %v1988_v40, %v1987_v41  ;;  %v1845_v30 = vadd.f32 %v1844_v39, %v1660_v15 }
 0x21e   :  { %v1662_v50 = vpop.f32.mrf.mxu1  ;;  %v1868_v24 = vpop.f32.mrf.mxu0 }
 0x21f   :  { %v1663_v16 = vadd.f32 %v1662_v50, %v1027_v27  ;;  %v1989_v12 = vmax.f32 %v1845_v30, 0.0 }
 0x220   :  { %v1664_v33 = vpop.f32.mrf.mxu1  ;;  %v1870_v19 = vpop.f32.mrf.mxu0 }
 0x221   :  { %v1848_v14 = vadd.f32 %v1847_v17, %v1663_v16 }
 0x222   :  { %v1667_v42 = vpop.f32.mrf.mxu1  ;;  %v1871_v44 = vpop.f32.mrf.mxu0 }
 0x223   :  { %v1990_v38 = vmax.f32 %v1848_v14, 0.0  ;;  %v1668_v22 = vadd.f32 %v1667_v42, %v1032_v9 }
 0x224   :  { %v1669_v11 = vpop.f32.mrf.mxu1  ;;  %v1873_v0 = vpop.f32.mrf.mxu0 }
 0x225   :  { %v3637_v43 = vpack.c.bf16 %v1990_v38, %v1989_v12  ;;  %v1853_v55 = vadd.f32 %v1852_v2, %v1668_v22 }
 0x226   :  { %v1670_v25 = vpop.f32.mrf.mxu1  ;;  %v1876_v4 = vpop.f32.mrf.mxu0 }
 0x227   :  { %v1671_v23 = vadd.f32 %v1670_v25, %v1037_v20  ;;  %v1991_v34 = vmax.f32 %v1853_v55, 0.0 }
 0x228   :  { %v1672_v39 = vpop.f32.mrf.mxu1  ;;  %v1878_v26 = vpop.f32.mrf.mxu0 }
 0x229   :  { %v1856_v6 = vadd.f32 %v1855_v36, %v1671_v23 }
 0x22a   :  { %v1675_v27 = vpop.f32.mrf.mxu1  ;;  %v1879_v60 = vpop.f32.mrf.mxu0 }
 0x22b   :  { %v1992_v17 = vmax.f32 %v1856_v6, 0.0  ;;  %v1676_v41 = vadd.f32 %v1675_v27, %v3619_v51  ;;  %v3647_v51 = vld [vmem:[%s3746_s5] sm:$0xff] }
 0x22c   :  { %v1677_v40 = vpop.f32.mrf.mxu1  ;;  %v1881_v15 = vpop.f32.mrf.mxu0  ;;  %v2309_v38 = vcombine.high %v3647_v51, %v3647_v51 }
 0x22d   :  { %v3640_v9 = vpack.c.bf16 %v1992_v17, %v1991_v34  ;;  %v1861_v56 = vadd.f32 %v1860_v13, %v1676_v41 }
 0x22e   :  { %v1678_v59 = vpop.f32.mrf.mxu1  ;;  %v1884_v30 = vpop.f32.mrf.mxu0  ;;  %2098 = vmatprep.mubr.bf16.mxu1 %v2309_v38 }
 0x22f   :  { %v1679_v2 = vadd.f32 %v1678_v59, %v3621_v1  ;;  %v1993_v19 = vmax.f32 %v1861_v56, 0.0 }
 0x230   :  { %v1680_v50 = vpop.f32.mrf.mxu1  ;;  %v1886_v20 = vpop.f32.mrf.mxu0 }
 0x231   :  { %v1864_v16 = vadd.f32 %v1863_v46, %v1679_v2 }
 0x232   :  { %v1683_v33 = vpop.f32.mrf.mxu1  ;;  %v1887_v36 = vpop.f32.mrf.mxu0 }
 0x233   :  { %v1994_v14 = vmax.f32 %v1864_v16, 0.0  ;;  %v1684_v42 = vadd.f32 %v1683_v33, %v3611_v35 }
 0x234   :  { %v1685_v12 = vpop.f32.mrf.mxu1  ;;  %v1889_v13 = vpop.f32.mrf.mxu0 }
 0x235   :  { %v3651_v1 = vpack.c.bf16 %v1994_v14, %v1993_v19  ;;  %v1869_v22 = vadd.f32 %v1868_v24, %v1684_v42 }
 0x236   :  { %v1686_v46 = vpop.f32.mrf.mxu1  ;;  %v1892_v11 = vpop.f32.mrf.mxu0 }
 0x237   :  { %v1687_v0 = vadd.f32 %v1686_v46, %v3613_v8  ;;  %v1995_v26 = vmax.f32 %v1869_v22, 0.0 }
 0x238   :  { %v1688_v55 = vpop.f32.mrf.mxu1  ;;  %v1894_v35 = vpop.f32.mrf.mxu0 }
 0x239   :  { %v1872_v25 = vadd.f32 %v1871_v44, %v1687_v0 }
 0x23a   :  { %v1691_v23 = vpop.f32.mrf.mxu1  ;;  %v1895_v39 = vpop.f32.mrf.mxu0 }
 0x23b   :  { %v1996_v6 = vmax.f32 %v1872_v25, 0.0  ;;  %v1692_v27 = vadd.f32 %v1691_v23, %v3594_v52 }
 0x23c   :  { %v1693_v34 = vpop.f32.mrf.mxu1  ;;  %v1897_v17 = vpop.f32.mrf.mxu0 }
 0x23d   :  { %v3655_v41 = vpack.c.bf16 %v1996_v6, %v1995_v26  ;;  %v1877_v40 = vadd.f32 %v1876_v4, %v1692_v27 }
 0x23e   :  { %v1694_v24 = vpop.f32.mrf.mxu1  ;;  %v1900_v15 = vpop.f32.mrf.mxu0 }
 0x23f   :  { %v1695_v56 = vadd.f32 %v1694_v24, %v3602_v37  ;;  %v1997_v20 = vmax.f32 %v1877_v40, 0.0 }
 0x240   :  { %v1696_v59 = vpop.f32.mrf.mxu1  ;;  %v1902_v8 = vpop.f32.mrf.mxu0 }
 0x241   :  { %v1880_v2 = vadd.f32 %v1879_v60, %v1695_v56 }
 0x242   :  { %v1699_v50 = vpop.f32.mrf.mxu1  ;;  %v1903_v44 = vpop.f32.mrf.mxu0 }
 0x243   :  { %v1998_v16 = vmax.f32 %v1880_v2, 0.0  ;;  %v1700_v33 = vadd.f32 %v1699_v50, %v3577_v32 }
 0x244   :  { %v1701_v19 = vpop.f32.mrf.mxu1  ;;  %v1905_v52 = vpop.f32.mrf.mxu0 }
 0x245   :  { %v3659_v14 = vpack.c.bf16 %v1998_v16, %v1997_v20  ;;  %v1885_v42 = vadd.f32 %v1884_v30, %v1700_v33 }
 0x246   :  { %v1702_v12 = vpop.f32.mrf.mxu1  ;;  %v1908_v4 = vpop.f32.mrf.mxu0 }
 0x247   :  { %v1703_v13 = vadd.f32 %v1702_v12, %v3582_v3  ;;  %v1999_v0 = vmax.f32 %v1885_v42, 0.0 }
 0x248   :  { %v1704_v38 = vpop.f32.mrf.mxu1  ;;  %v1910_v37 = vpop.f32.mrf.mxu0 }
 0x249   :  { %v1888_v22 = vadd.f32 %v1887_v36, %v1703_v13 }
 0x24a   :  { %v1707_v46 = vpop.f32.mrf.mxu1  ;;  %v1911_v60 = vpop.f32.mrf.mxu0 }
 0x24b   :  { %v2000_v55 = vmax.f32 %v1888_v22, 0.0  ;;  %v1708_v35 = vadd.f32 %v1707_v46, %v3549_v61 }
 0x24c   :  { %v1709_v25 = vpop.f32.mrf.mxu1  ;;  %v1913_v32 = vpop.f32.mrf.mxu0 }
 0x24d   :  { %v3663_v23 = vpack.c.bf16 %v2000_v55, %v1999_v0  ;;  %v1893_v26 = vadd.f32 %v1892_v11, %v1708_v35 }
 0x24e   :  { %v1710_v6 = vpop.f32.mrf.mxu1  ;;  %v1916_v30 = vpop.f32.mrf.mxu0 }
 0x24f   :  { %v1711_v27 = vadd.f32 %v1710_v6, %v3558_v29  ;;  %v2001_v24 = vmax.f32 %v1893_v26, 0.0 }
 0x250   :  { %v1712_v34 = vpop.f32.mrf.mxu1  ;;  %v1918_v3 = vpop.f32.mrf.mxu0 }
 0x251   :  { %v1896_v17 = vadd.f32 %v1895_v39, %v1711_v27 }
 0x252   :  { %v1715_v40 = vpop.f32.mrf.mxu1  ;;  %v1919_v36 = vpop.f32.mrf.mxu0 }
 0x253   :  { %v2002_v56 = vmax.f32 %v1896_v17, 0.0  ;;  %v1716_v59 = vadd.f32 %v1715_v40, %v3631_v49 }
 0x254   :  { %v1717_v8 = vpop.f32.mrf.mxu1  ;;  %v1921_v61 = vpop.f32.mrf.mxu0 }
 0x255   :  { %v3667_v2 = vpack.c.bf16 %v2002_v56, %v2001_v24  ;;  %v1901_v50 = vadd.f32 %v1900_v15, %v1716_v59 }
 0x256   :  { %v1718_v20 = vpop.f32.mrf.mxu1  ;;  %v1924_v11 = vpop.f32.mrf.mxu0 }
 0x257   :  { %v1719_v16 = vadd.f32 %v1718_v20, %v3633_v21  ;;  %v2003_v42 = vmax.f32 %v1901_v50, 0.0 }
 0x258   :  { %v1720_v33 = vpop.f32.mrf.mxu1  ;;  %v1926_v29 = vpop.f32.mrf.mxu0 }
 0x259   :  { %v1904_v19 = vadd.f32 %v1903_v44, %v1719_v16 }
 0x25a   :  { %v1723_v52 = vpop.f32.mrf.mxu1  ;;  %v1927_v39 = vpop.f32.mrf.mxu0 }
 0x25b   :  { %v2004_v12 = vmax.f32 %v1904_v19, 0.0  ;;  %v1724_v13 = vadd.f32 %v1723_v52, %v3627_v31 }
 0x25c   :  { %v1725_v38 = vpop.f32.mrf.mxu1  ;;  %v1929_v49 = vpop.f32.mrf.mxu0 }
 0x25d   :  { %v1909_v37 = vadd.f32 %v1908_v4, %v1724_v13  ;;  %v3671_v22 = vpack.c.bf16 %v2004_v12, %v2003_v42 }
 0x25e   :  { %v1726_v46 = vpop.f32.mrf.mxu1  ;;  %v3673_v15 = vpop.f32.mrf.mxu0 }
 0x25f   :  { %v1727_v0 = vadd.f32 %v1726_v46, %v3629_v57  ;;  %v2005_v32 = vmax.f32 %v1909_v37, 0.0 }
 0x260   :  { %v1728_v21 = vpop.f32.mrf.mxu1  ;;  %v1934_v55 = vpop.f32.mrf.mxu0 }
 0x261   :  { %v1912_v35 = vadd.f32 %v1911_v60, %v1727_v0 }
 0x262   :  { %v1731_v44 = vpop.f32.mrf.mxu1  ;;  %v3676_v25 = vpop.f32.mrf.mxu0 }
 0x263   :  { %v2006_v26 = vmax.f32 %v1912_v35, 0.0  ;;  %v1732_v31 = vadd.f32 %v1731_v44, %v3623_v28 }
 0x264   :  { %v1733_v6 = vpop.f32.mrf.mxu1  ;;  %v1937_v27 = vpop.f32.mrf.mxu0 }
 0x265   :  { %v3679_v4 = vpack.c.bf16 %v2006_v26, %v2005_v32  ;;  %v1917_v17 = vadd.f32 %v1916_v30, %v1732_v31 }
 0x266   :  { %v1734_v34 = vpop.f32.mrf.mxu1  ;;  %v3681_v3 = vpop.f32.mrf.mxu0 }
 0x267   :  { %v1735_v57 = vadd.f32 %v1734_v34, %v3625_v48  ;;  %v2007_v8 = vmax.f32 %v1917_v17, 0.0 }
 0x268   :  { %v1736_v40 = vpop.f32.mrf.mxu1  ;;  %v1942_v24 = vpop.f32.mrf.mxu0 }
 0x269   :  { %v1920_v60 = vadd.f32 %v1919_v36, %v1735_v57 }
 0x26a   :  { %v1739_v56 = vpop.f32.mrf.mxu1  ;;  %v1943_v59 = vpop.f32.mrf.mxu0 }
 0x26b   :  { %v2008_v61 = vmax.f32 %v1920_v60, 0.0  ;;  %v1740_v50 = vadd.f32 %v1739_v56, %v3615_v62 }
 0x26c   :  { %v1741_v28 = vpop.f32.mrf.mxu1  ;;  %v1945_v20 = vpop.f32.mrf.mxu0 }
 0x26d   :  { %v3685_v16 = vpack.c.bf16 %v2008_v61, %v2007_v8  ;;  %v1925_v19 = vadd.f32 %v1924_v11, %v1740_v50 }
 0x26e   :  { %v1742_v33 = vpop.f32.mrf.mxu1  ;;  %v1948_v29 = vpop.f32.mrf.mxu0 }
 0x26f   :  { %v1743_v30 = vadd.f32 %v1742_v33, %v3617_v45  ;;  %v2009_v13 = vmax.f32 %v1925_v19, 0.0 }
 0x270   :  { %v1744_v52 = vpop.f32.mrf.mxu1  ;;  %v1950_v48 = vpop.f32.mrf.mxu0 }
 0x271   :  { %v1928_v42 = vadd.f32 %v1927_v39, %v1743_v30 }
 0x272   :  { %v1747_v12 = vpop.f32.mrf.mxu1  ;;  %v1951_v36 = vpop.f32.mrf.mxu0 }
 0x273   :  { %v2010_v38 = vmax.f32 %v1928_v42, 0.0 }
 0x274   :  { %v1749_v49 = vpop.f32.mrf.mxu1  ;;  %v1953_v37 = vpop.f32.mrf.mxu0 }
 0x275   :  { %v3688_v46 = vpack.c.bf16 %v2010_v38, %v2009_v13 }
 0x276   :  { %v1750_v62 = vpop.f32.mrf.mxu1  ;;  %v1956_v0 = vpop.f32.mrf.mxu0 }
 0x278   :  { %v1752_v21 = vpop.f32.mrf.mxu1  ;;  %v1958_v55 = vpop.f32.mrf.mxu0 }
 0x27a   :  { %v1755_v35 = vpop.f32.mrf.mxu1  ;;  %v1959_v44 = vpop.f32.mrf.mxu0 }
 0x27b   :  { %v1756_v37 = vadd.f32 %v1755_v35, %v3587_v7 }
 0x27c   :  { %v1757_v11 = vpop.f32.mrf.mxu1  ;;  %v1961_v32 = vpop.f32.mrf.mxu0 }
 0x27e   :  { %v1758_v45 = vpop.f32.mrf.mxu1  ;;  %v3690_v26 = vpop.f32.mrf.mxu0 }
 0x27f   :  { %v1759_v52 = vadd.f32 %v1758_v45, %v3592_v47 }
 0x280   :  { %v1760_v39 = vpop.f32.mrf.mxu1  ;;  %v1966_v31 = vpop.f32.mrf.mxu0 }
 0x282   :  { %v1763_v6 = vpop.f32.mrf.mxu1  ;;  %v3692_v27 = vpop.f32.mrf.mxu0 }
 0x283   :  { %v1764_v33 = vadd.f32 %v1763_v6, %v3563_v53  ;;  %v1944_v53 = vadd.f32 %v1943_v59, %v1759_v52 }
 0x284   :  { %v1765_v34 = vpop.f32.mrf.mxu1  ;;  %v1969_v17 = vpop.f32.mrf.mxu0 }
 0x286   :  { %v1766_v57 = vpop.f32.mrf.mxu1  ;;  %v3694_v40 = vpop.f32.mrf.mxu0 }
 0x287   :  { %v1767_v61 = vadd.f32 %v1766_v57, %v3571_v5  ;;  %v1949_v5 = vadd.f32 %v1948_v29, %v1764_v33  ;;  %v2014_v29 = vmax.f32 %v1944_v53, 0.0 }
 0x288   :  { %v1768_v24 = vpop.f32.mrf.mxu1  ;;  %v1974_v60 = vpop.f32.mrf.mxu0 }
 0x289   :  { %v1952_v48 = vadd.f32 %v1951_v36, %v1767_v61  ;;  %v1748_v36 = vadd.f32 %v1747_v12, %v3604_v18  ;;  %v1192_v61 = vpop.permute.xlu0 %1191 }
 0x28a   :  { %v1771_v56 = vpop.f32.mrf.mxu1  ;;  %v3696_v8 = vpop.f32.mrf.mxu0 }
 0x28b   :  { %v1772_v50 = vadd.f32 %v1771_v56, %v3535_v58  ;;  %v1751_v58 = vadd.f32 %v1750_v62, %v3609_v54  ;;  %v2016_v32 = vmax.f32 %v1952_v48, 0.0  ;;  %v1933_v59 = vadd.f32 %v3673_v15, %v1748_v36  ;;  %v1197_v15 = vpop.permute.xlu1 %1196 }
 0x28c   :  { %v1773_v28 = vpop.f32.mrf.mxu1  ;;  %v1977_v20 = vpop.f32.mrf.mxu0 }
 0x28d   :  { %v1957_v42 = vadd.f32 %v1956_v0, %v1772_v50  ;;  %v2015_v0 = vmax.f32 %v1949_v5, 0.0  ;;  %v1936_v7 = vadd.f32 %v3676_v25, %v1751_v58 }
 0x28e   :  { %v1774_v19 = vpop.f32.mrf.mxu1  ;;  %v3701_v30 = vpop.f32.mrf.mxu0 }
 0x28f   :  { %v1775_v13 = vadd.f32 %v1774_v19, %v3544_v10  ;;  %v2017_v39 = vmax.f32 %v1957_v42, 0.0  ;;  %v1941_v10 = vadd.f32 %v3681_v3, %v1756_v37  ;;  %v2041_v54 = vpack.c.bf16 %v2016_v32, %v2015_v0  ;;  %v1187_v28 = vpop.permute.xlu1 %1186 }
 0x290   :  { %v1776_v38 = vpop.f32.mrf.mxu1  ;;  %v1982_v49 = vpop.f32.mrf.mxu0  ;;  %v2012_v17 = vmax.f32 %v1936_v7, 0.0  ;;  %v2011_v3 = vmax.f32 %v1933_v59, 0.0 }
 0x291   :  { %v1960_v21 = vadd.f32 %v1959_v44, %v1775_v13  ;;  %v2013_v35 = vmax.f32 %v1941_v10, 0.0 }
 0x292   :  { %v1779_v55 = vpop.f32.mrf.mxu1  ;;  %v1983_v11 = vpop.f32.mrf.mxu0  ;;  %v2039_v25 = vpack.c.bf16 %v2012_v17, %v2011_v3 }
 0x293   :  { %v2018_v31 = vmax.f32 %v1960_v21, 0.0  ;;  %v2040_v18 = vpack.c.bf16 %v2014_v29, %v2013_v35  ;;  %v1177_v52 = vpop.permute.xlu1 %1176 }
 0x294   :  { %v1781_v6 = vpop.f32.mrf.mxu1  ;;  %v1985_v47 = vpop.f32.mrf.mxu0 }
 0x295   :  { %v2042_v45 = vpack.c.bf16 %v2018_v31, %v2017_v39 }
 0x296   :  { %v1782_v34 = vpop.f32.mrf.mxu1 }
 0x297   :  { %2338 = vmatprep.subr.bf16.mxu1 %v2042_v45 }
 0x298   :  { %v1784_v62 = vpop.f32.mrf.mxu1  ;;  %2339 = vmatpush3.bf16.msra.mxu1 %v3667_v2 }
 0x299   :  { %2340 = vmatprep.subr.bf16.mxu1 %v2041_v54 }
 0x29a   :  { %v1787_v44 = vpop.f32.mrf.mxu1 }
 0x29c   :  { %v1789_v12 = vpop.f32.mrf.mxu1  ;;  %2341 = vmatpush3.bf16.msra.mxu1 %v3663_v23 }
 0x29d   :  { %2342 = vmatprep.subr.bf16.mxu1 %v2040_v18 }
 0x29e   :  { %v1790_v57 = vpop.f32.mrf.mxu1 }
 0x29f   :  { %v1791_v33 = vadd.f32 %v1790_v57, %v1187_v28 }
 0x2a0   :  { %v1792_v24 = vpop.f32.mrf.mxu1  ;;  %2343 = vmatpush3.bf16.msra.mxu1 %v3659_v14  ;;  %v1182_v14 = vpop.permute.xlu0 %1181 }
 0x2a1   :  { %2344 = vmatprep.subr.bf16.mxu1 %v2039_v25  ;;  %v1788_v19 = vadd.f32 %v1787_v44, %v1182_v14 }
 0x2a2   :  { %v1795_v60 = vpop.f32.mrf.mxu1 }
 0x2a3   :  { %v1796_v20 = vadd.f32 %v1795_v60, %v1192_v61 }
 0x2a4   :  { %v1797_v2 = vpop.f32.mrf.mxu1  ;;  %2345 = vmatpush3.bf16.msra.mxu1 %v3655_v41  ;;  %v1172_v42 = vpop.permute.xlu0 %1171 }
 0x2a5   :  { %2346 = vmatprep.subr.bf16.mxu1 %v3688_v46  ;;  %v1981_v46 = vadd.f32 %v3701_v30, %v1796_v20  ;;  %v1780_v13 = vadd.f32 %v1779_v55, %v1172_v42  ;;  %v3774_v30 = vmov 0.0  }
 0x2a6   :  { %v1798_v56 = vpop.f32.mrf.mxu1 }
 0x2a7   :  { %v1799_v50 = vadd.f32 %v1798_v56, %v1197_v15  ;;  %v2023_v38 = vmax.f32 %v1981_v46, 0.0 }
 0x2a8   :  { %2347 = vmatpush3.bf16.msra.mxu1 %v3651_v1  ;;  %v1800_v23 = vpop.f32.mrf.mxu1  ;;  %v1783_v1 = vadd.f32 %v1782_v34, %v1177_v52  ;;  %v2050_v53 = vpop.permute.xlu0 %2049 }
 0x2a9   :  { %2348 = vmatprep.subr.bf16.mxu1 %v3685_v16  ;;  %v1984_v41 = vadd.f32 %v1983_v11, %v1799_v50  ;;  %v1976_v16 = vadd.f32 %v3696_v8, %v1791_v33  ;;  %v1965_v8 = vadd.f32 %v3690_v26, %v1780_v13 }
 0x2ab   :  { %v2024_v48 = vmax.f32 %v1984_v41, 0.0  ;;  %v2022_v49 = vmax.f32 %v1976_v16, 0.0  ;;  %v2019_v5 = vmax.f32 %v1965_v8, 0.0 }
 0x2ac   :  { %2349 = vmatpush3.bf16.msra.mxu1 %v3640_v9  ;;  %v2308_v9 = vcombine.low %v3647_v51, %v3647_v51 }
 0x2ad   :  { %2350 = vmatprep.subr.bf16.mxu1 %v3679_v4  ;;  %v1973_v4 = vadd.f32 %v3694_v40, %v1788_v19 }
 0x2af   :  { %v2021_v37 = vmax.f32 %v1973_v4, 0.0 }
 0x2b0   :  { %2351 = vmatpush3.bf16.msra.mxu1 %v3637_v43  ;;  %v1968_v43 = vadd.f32 %v3692_v27, %v1783_v1  ;;  %v2626_v27 = vld [vmem:[%s3746_s5 + $0x8] ss:$0 sps:$4 sm:$0xff]   ;;  %s2629_s5 = scalar_lea.vmem %s2155_s21, 128 }
 0x2b1   :  { %2352 = vmatprep.subr.bf16.mxu1 %v3671_v22  ;;  %v2045_v22 = vpack.c.bf16 %v2024_v48, %v2023_v38  ;;  %v2044_v40 = vpack.c.bf16 %v2022_v49, %v2021_v37  ;;  %p2630_p0 = scmp.ne.s32.totalorder %s2155_s21, %s2629_s5  ;;  %p2635_p2 = scmp.lt.s32.totalorder %s2629_s5, %s2629_s5 }
 0x2b2   :  { %v2020_v51 = vmax.f32 %v1968_v43, 0.0 }
 0x2b3   :  { %p2636_p3 = por %p2635_p2, %p2634_p1 }
 0x2b4   :  { %2353 = vmatpush3.bf16.msra.mxu1 %v3635_v63  ;;  %v2043_v63 = vpack.c.bf16 %v2020_v51, %v2019_v5 }
 0x2b5   :  { %2466 = vmatprep.subr.bf16.mxu1 %v3774_v30  ;;  %p2637_p4 = pnand %p2636_p3, %p2630_p0 }
 0x2b7   :  { %2099 = vmatmul.mubr.bf16.vlgmr.msra.gmra.mxu1 %v2308_v9 }
 0x2b8   :  { %2467 = vmatpush3.bf16.msra.mxu1 %v2045_v22  ;;  %2472 = vmatprep.mubr.msk.bf16.mxu1 %vm2653_vm0, %v3774_v30 }
 0x2b9   :  { %2468 = vmatprep.subr.bf16.mxu1 %v3774_v30 }
 0x2bc   :  { %2469 = vmatpush3.bf16.msra.mxu1 %v2044_v40 }
 0x2bd   :  { %2470 = vmatprep.subr.bf16.mxu1 %v3774_v30 }
 0x2c0   :  { %2471 = vmatpush3.bf16.msra.mxu1 %v2043_v63 }
 0x2c3   :  { %2473 = vmatmul.mubr.msk.bf16.vlgmr.msra.gmra.mxu1 %vm2062_vm2, %v2626_v27 }
 0x377   :  { %v2354_v26 = vpop.f32.mrf.mxu1 }
 0x379   :  { %v2355_v21 = vpop.f32.mrf.mxu1 }
 0x37a   :  { %v2356_v11 = vadd.f32 %v2355_v21, %v2354_v26 }
 0x37b   :  { %v2357_v58 = vpop.f32.mrf.mxu1 }
 0x37c   :  { %v2101_v32 = vadd.f32 %v2356_v11, %v2050_v53 }
 0x37d   :  { %v2358_v55 = vpop.f32.mrf.mxu1 }
 0x383   :  { %v2140_v39 = vpop.f32.mrf.mxu1 }
 0x384   :  { %v2141_v31 = vadd.f32 %v2140_v39, %v2101_v32 }
 0x385   :  { %v2474_v6 = vpop.f32.mrf.mxu1 }
 0x386   :  { %2627 = vtanh.f32 %v2141_v31 }
 0x387   :  { %v2143_v47 = vpop.f32.mrf.mxu1 }
 0x389   :  { %v2475_v36 = vpop.f32.mrf.mxu1 }
 0x393   :  { %v2628_v10 = vpop.eup %2627 }
 0x394   :  { %2147 = vst [vmem:[#allocation2] sm:$0xff] %v2628_v10 }
 0x395   :  { %2640 = shalt.err (!%p2637_p4)
}
 0x396   :  { %2157 = dma.vmem_to_hbm [thread:$0]  %s2155_s21, 128, %s3748_s7, [#allocation3]  }
 0x397   :  { %2649 = dma.done.wait [#allocation3], 128  }
 0x398   :  { %2650 = vsyncadd [#allocation3], 4294967168 }
 0x399   :  { %2161 = vsyncpa [#allocation3], 1 }

</bundles_post_ra>
